<compile_context>
chip_gen: v5e
topology: v5e:2x2
jax: 0.10.0
libtpu: 0.0.40
codegen_flags: <defaults>
</compile_context>

<pallas_src>
import functools

import jax
import jax.numpy as jnp
import numpy as np
from jax import lax
from jax.experimental import pallas as pl
from jax.experimental.pallas import tpu as pltpu


def caption_kernel(img_ref, cap_ref,
                   wimg_ref, bimg_ref,
                   w1_ref, w1f_ref, b1_ref,
                   w2_ref, b2_ref,
                   wlin_ref, blin_ref,
                   out_ref,
                   h2_scr):
    B = img_ref.shape[0]
    S = cap_ref.shape[0]
    H = wimg_ref.shape[1]

    img = img_ref[...]                                     # [B, F]

    # ---- hoisted, computed once per sequence ----
    # h0 = c0 = img_embed(image_vectors)
    h0 = jnp.dot(img, wimg_ref[...],
                 preferred_element_type=jnp.float32) + bimg_ref[...]
    # Image (context) branch of LSTM1's input gates + fused biases.
    img_gates = jnp.dot(img, w1f_ref[...],
                        preferred_element_type=jnp.float32) + b1_ref[...]

    w1 = w1_ref[...]                                       # [E+H, 4H]
    w2 = w2_ref[...]                                       # [H, 4H]  (W_ih2 + W_hh2).T
    b2 = b2_ref[...]                                       # [1, 4H]

    def step(t, carry):
        h, c = carry                                       # [B, H], [B, H] (vregs)
        word = cap_ref[t]                                  # [B, E]  (teacher forcing)

        # ---- LSTM1: input = concat([word, context]); image branch hoisted ----
        x = jnp.concatenate([word, h], axis=1)             # [B, E+H]
        g1 = jnp.dot(x, w1, preferred_element_type=jnp.float32) + img_gates
        i1 = jax.nn.sigmoid(g1[:, 0 * H:1 * H])
        f1 = jax.nn.sigmoid(g1[:, 1 * H:2 * H])
        n1 = jnp.tanh(g1[:, 2 * H:3 * H])
        o1 = jax.nn.sigmoid(g1[:, 3 * H:4 * H])
        c1 = f1 * c + i1 * n1
        h1 = o1 * jnp.tanh(c1)

        # ---- LSTM2: input = h1, initial state = (h1, c1); weights fused ----
        g2 = jnp.dot(h1, w2, preferred_element_type=jnp.float32) + b2
        i2 = jax.nn.sigmoid(g2[:, 0 * H:1 * H])
        f2 = jax.nn.sigmoid(g2[:, 1 * H:2 * H])
        n2 = jnp.tanh(g2[:, 2 * H:3 * H])
        o2 = jax.nn.sigmoid(g2[:, 3 * H:4 * H])
        c2 = f2 * c1 + i2 * n2
        h2 = o2 * jnp.tanh(c2)

        # Stash h2 for the batched vocab projection after the loop.
        row = pl.multiple_of(t * B, B)
        h2_scr[pl.ds(row, B), :] = h2

        # lstm2's state carries to the next timestep.
        return (h2, c2)

    lax.fori_loop(0, S, step, (h0, h0), unroll=True)

    # ---- batched output projection over all timesteps (dropout = identity) ----
    logits = jnp.dot(h2_scr[...], wlin_ref[...],
                     preferred_element_type=jnp.float32) + blin_ref[...]
    out_ref[...] = logits                                  # [S*B, V]


def caption_net_forward(image_vectors, captions_ix, params):
    """Full forward pass; embedding gather + weight packing/transposes are glue."""
    B, F = image_vectors.shape
    S = captions_ix.shape[1]
    H = params["b_img"].shape[0]
    V, E = params["embed"].shape

    # Glue: embedding lookup, seq-major staging, weight packing.
    cap_sbe = jnp.transpose(params["embed"][captions_ix], (1, 0, 2))   # [S, B, E]

    wimg = params["W_img"].T                                           # [F, H]
    bimg = params["b_img"][None, :]                                    # [1, H]
    b1 = (params["b_ih1"] + params["b_hh1"])[None, :]                  # [1, 4H]
    w1 = jnp.concatenate([params["W_ih1"][:, :E].T,                    # [E+H, 4H]
                          params["W_hh1"].T], axis=0)
    w1f = params["W_ih1"][:, E:].T                                     # [F, 4H]
    w2 = (params["W_ih2"] + params["W_hh2"]).T                         # [H, 4H]
    b2 = (params["b_ih2"] + params["b_hh2"])[None, :]                  # [1, 4H]
    wlin = params["W_lin"].T                                           # [H, V]
    blin = params["b_lin"][None, :]                                    # [1, V]

    def spec(*shape):
        return pl.BlockSpec(shape, lambda i, _shape=shape: (0,) * len(_shape))

    out_flat = pl.pallas_call(
        caption_kernel,
        out_shape=jax.ShapeDtypeStruct((S * B, V), jnp.float32),
        grid_spec=pltpu.PrefetchScalarGridSpec(
            num_scalar_prefetch=0,
            grid=(1,),
            in_specs=[
                spec(B, F),                     # image_vectors
                spec(S, B, E),                  # caption embeddings (seq-major)
                spec(F, H), spec(1, H),         # img_embed
                spec(E + H, 4 * H),             # lstm1: stacked [W_ih1[:, :E].T; W_hh1.T]
                spec(F, 4 * H),                 # lstm1: image branch W_ih1[:, E:].T
                spec(1, 4 * H),                 # lstm1: fused bias
                spec(H, 4 * H), spec(1, 4 * H),  # lstm2: fused weight, fused bias
                spec(H, V), spec(1, V),         # output linear
            ],
            out_specs=spec(S * B, V),
            scratch_shapes=[pltpu.VMEM((S * B, H), jnp.float32)],   # h2 per step
        ),
        compiler_params=pltpu.CompilerParams(
            dimension_semantics=("arbitrary",)),
    )(image_vectors, cap_sbe, wimg, bimg, w1, w1f, b1, w2, b2, wlin, blin)

    # [S*B, V] -> [S, B, V] -> [B, S, V]
    return jnp.transpose(out_flat.reshape(S, B, V), (1, 0, 2))


def reference_forward(image_vectors, captions_ix, params):
    """Pure-JAX reference reproducing the PyTorch module (teacher forcing)."""
    B, F = image_vectors.shape
    S = captions_ix.shape[1]
    H = params["b_img"].shape[0]

    def lstm_cell(x, h, c, W_ih, W_hh, b_ih, b_hh):
        g = x @ W_ih.T + b_ih + h @ W_hh.T + b_hh
        i = jax.nn.sigmoid(g[:, 0 * H:1 * H])
        f = jax.nn.sigmoid(g[:, 1 * H:2 * H])
        gg = jnp.tanh(g[:, 2 * H:3 * H])
        o = jax.nn.sigmoid(g[:, 3 * H:4 * H])
        c_new = f * c + i * gg
        h_new = o * jnp.tanh(c_new)
        return h_new, c_new

    img_emb = image_vectors @ params["W_img"].T + params["b_img"]
    h, c = img_emb, img_emb
    cap_emb = params["embed"][captions_ix]
    outs = []
    for t in range(S):
        word = cap_emb[:, t, :]
        context = image_vectors   # attention weights are all 1 (softmax over dim of size 1)
        x = jnp.concatenate([word, context], axis=1)
        h1, c1 = lstm_cell(x, h, c, params["W_ih1"], params["W_hh1"],
                           params["b_ih1"], params["b_hh1"])
        h2, c2 = lstm_cell(h1, h1, c1, params["W_ih2"], params["W_hh2"],
                           params["b_ih2"], params["b_hh2"])
        logits = h2 @ params["W_lin"].T + params["b_lin"]
        outs.append(logits)
        h, c = h2, c2
    return jnp.stack(outs, axis=1)


if __name__ == "__main__":
    # Small shapes consistent with the module's forward (num_layers = 1).
    B, F, E, H, V, S = 8, 128, 32, 32, 64, 8

    key = jax.random.PRNGKey(0)
    ks = jax.random.split(key, 16)
    norm = lambda k, shape, s=0.05: (jax.random.normal(k, shape, jnp.float32) * s)

    params = {
        "W_img": norm(ks[0], (H, F)),
        "b_img": norm(ks[1], (H,)),
        "embed": norm(ks[2], (V, E), 0.2),
        "W_ih1": norm(ks[3], (4 * H, E + F)),
        "W_hh1": norm(ks[4], (4 * H, H)),
        "b_ih1": norm(ks[5], (4 * H,)),
        "b_hh1": norm(ks[6], (4 * H,)),
        "W_ih2": norm(ks[7], (4 * H, H)),
        "W_hh2": norm(ks[8], (4 * H, H)),
        "b_ih2": norm(ks[9], (4 * H,)),
        "b_hh2": norm(ks[10], (4 * H,)),
        "W_lin": norm(ks[11], (V, H)),
        "b_lin": norm(ks[12], (V,)),
    }

    image_vectors = jax.random.normal(ks[13], (B, F), jnp.float32)
    captions_ix = jax.random.randint(ks[14], (B, S), 0, V, jnp.int32)

    out = jax.block_until_ready(
        jax.jit(functools.partial(caption_net_forward, params=params))(
            image_vectors, captions_ix))
    ref = reference_forward(image_vectors, captions_ix, params)

    assert out.shape == (B, S, V), out.shape
    np.testing.assert_allclose(np.asarray(out), np.asarray(ref),
                               rtol=1e-5, atol=2e-5)
    print("KERNEL_OK")
</pallas_src>

<mosaic_0001>
module attributes {stable_mosaic.version = 11 : i64} {
  func.func @caption_kernel(%arg0: i32, %arg1: memref<8x128xf32, #tpu.memory_space<vmem>>, %arg2: memref<8x8x32xf32, #tpu.memory_space<vmem>>, %arg3: memref<128x32xf32, #tpu.memory_space<vmem>>, %arg4: memref<1x32xf32, #tpu.memory_space<vmem>>, %arg5: memref<64x128xf32, #tpu.memory_space<vmem>>, %arg6: memref<128x128xf32, #tpu.memory_space<vmem>>, %arg7: memref<1x128xf32, #tpu.memory_space<vmem>>, %arg8: memref<32x128xf32, #tpu.memory_space<vmem>>, %arg9: memref<1x128xf32, #tpu.memory_space<vmem>>, %arg10: memref<32x64xf32, #tpu.memory_space<vmem>>, %arg11: memref<1x64xf32, #tpu.memory_space<vmem>>, %arg12: memref<64x64xf32, #tpu.memory_space<vmem>>, %arg13: memref<64x32xf32, #tpu.memory_space<vmem>>) attributes {dimension_semantics = [#tpu.dimension_semantics<arbitrary>], iteration_bounds = array<i64: 1>, scalar_prefetch = 0 : i64, scratch_operands = 1 : i64, tpu.core_type = #tpu.core_type<tc>, window_params = [{pipeline_mode = #tpu.pipeline_mode<synchronous>, transform_indices = @transform_0, window_bounds = array<i64: 8, 128>}, {pipeline_mode = #tpu.pipeline_mode<synchronous>, transform_indices = @transform_1, window_bounds = array<i64: 8, 8, 32>}, {pipeline_mode = #tpu.pipeline_mode<synchronous>, transform_indices = @transform_2, window_bounds = array<i64: 128, 32>}, {pipeline_mode = #tpu.pipeline_mode<synchronous>, transform_indices = @transform_3, window_bounds = array<i64: 1, 32>}, {pipeline_mode = #tpu.pipeline_mode<synchronous>, transform_indices = @transform_4, window_bounds = array<i64: 64, 128>}, {pipeline_mode = #tpu.pipeline_mode<synchronous>, transform_indices = @transform_5, window_bounds = array<i64: 128, 128>}, {pipeline_mode = #tpu.pipeline_mode<synchronous>, transform_indices = @transform_6, window_bounds = array<i64: 1, 128>}, {pipeline_mode = #tpu.pipeline_mode<synchronous>, transform_indices = @transform_7, window_bounds = array<i64: 32, 128>}, {pipeline_mode = #tpu.pipeline_mode<synchronous>, transform_indices = @transform_8, window_bounds = array<i64: 1, 128>}, {pipeline_mode = #tpu.pipeline_mode<synchronous>, transform_indices = @transform_9, window_bounds = array<i64: 32, 64>}, {pipeline_mode = #tpu.pipeline_mode<synchronous>, transform_indices = @transform_10, window_bounds = array<i64: 1, 64>}, {pipeline_mode = #tpu.pipeline_mode<synchronous>, transform_indices = @transform_11, window_bounds = array<i64: 64, 64>}]} {
    %c0 = arith.constant 0 : index
    %c0_0 = arith.constant 0 : index
    %0 = vector.load %arg1[%c0, %c0_0] : memref<8x128xf32, #tpu.memory_space<vmem>>, vector<8x128xf32>
    %c0_1 = arith.constant 0 : index
    %c0_2 = arith.constant 0 : index
    %1 = vector.load %arg3[%c0_1, %c0_2] : memref<128x32xf32, #tpu.memory_space<vmem>>, vector<128x32xf32>
    %cst = arith.constant dense<0.000000e+00> : vector<8x32xf32>
    %2 = tpu.matmul %0, %1, %cst {dimension_numbers = #tpu.dot_dimension_numbers<[1], [0], [0], [1], [0, 0, 1, 1], [], []>} : vector<8x128xf32>, vector<128x32xf32>, vector<8x32xf32> -> vector<8x32xf32>
    %c0_3 = arith.constant 0 : index
    %c0_4 = arith.constant 0 : index
    %3 = vector.load %arg4[%c0_3, %c0_4] : memref<1x32xf32, #tpu.memory_space<vmem>>, vector<1x32xf32>
    %4 = vector.broadcast %3 : vector<1x32xf32> to vector<8x32xf32>
    %5 = arith.addf %2, %4 : vector<8x32xf32>
    %c0_5 = arith.constant 0 : index
    %c0_6 = arith.constant 0 : index
    %6 = vector.load %arg6[%c0_5, %c0_6] : memref<128x128xf32, #tpu.memory_space<vmem>>, vector<128x128xf32>
    %cst_7 = arith.constant dense<0.000000e+00> : vector<8x128xf32>
    %7 = tpu.matmul %0, %6, %cst_7 {dimension_numbers = #tpu.dot_dimension_numbers<[1], [0], [0], [1], [0, 0, 1, 1], [], []>} : vector<8x128xf32>, vector<128x128xf32>, vector<8x128xf32> -> vector<8x128xf32>
    %c0_8 = arith.constant 0 : index
    %c0_9 = arith.constant 0 : index
    %8 = vector.load %arg7[%c0_8, %c0_9] : memref<1x128xf32, #tpu.memory_space<vmem>>, vector<1x128xf32>
    %9 = vector.broadcast %8 : vector<1x128xf32> to vector<8x128xf32>
    %10 = arith.addf %7, %9 : vector<8x128xf32>
    %c0_10 = arith.constant 0 : index
    %c0_11 = arith.constant 0 : index
    %11 = vector.load %arg5[%c0_10, %c0_11] : memref<64x128xf32, #tpu.memory_space<vmem>>, vector<64x128xf32>
    %c0_12 = arith.constant 0 : index
    %c0_13 = arith.constant 0 : index
    %12 = vector.load %arg8[%c0_12, %c0_13] : memref<32x128xf32, #tpu.memory_space<vmem>>, vector<32x128xf32>
    %c0_14 = arith.constant 0 : index
    %c0_15 = arith.constant 0 : index
    %13 = vector.load %arg9[%c0_14, %c0_15] : memref<1x128xf32, #tpu.memory_space<vmem>>, vector<1x128xf32>
    %c0_i32 = arith.constant 0 : i32
    %14 = arith.index_cast %c0_i32 : i32 to index
    %c0_16 = arith.constant 0 : index
    %c0_17 = arith.constant 0 : index
    %15 = vector.load %arg2[%14, %c0_16, %c0_17] : memref<8x8x32xf32, #tpu.memory_space<vmem>>, vector<1x8x32xf32>
    %16 = vector.shape_cast %15 : vector<1x8x32xf32> to vector<8x32xf32>
    %17 = tpu.concatenate %16, %5 in 1 : vector<8x32xf32>, vector<8x32xf32> -> vector<8x64xf32>
    %cst_18 = arith.constant dense<0.000000e+00> : vector<8x128xf32>
    %18 = tpu.matmul %17, %11, %cst_18 {dimension_numbers = #tpu.dot_dimension_numbers<[1], [0], [0], [1], [0, 0, 1, 1], [], []>} : vector<8x64xf32>, vector<64x128xf32>, vector<8x128xf32> -> vector<8x128xf32>
    %19 = arith.addf %18, %10 : vector<8x128xf32>
    %20 = vector.extract_strided_slice %19 {offsets = [0, 0], sizes = [8, 32], strides = [1, 1]} : vector<8x128xf32> to vector<8x32xf32>
    %21 = arith.negf %20 : vector<8x32xf32>
    %22 = math.exp %21 : vector<8x32xf32>
    %cst_19 = arith.constant 1.000000e+00 : f32
    %23 = vector.broadcast %cst_19 : f32 to vector<8x32xf32>
    %24 = arith.addf %23, %22 : vector<8x32xf32>
    %25 = arith.divf %23, %24 : vector<8x32xf32>
    %26 = vector.extract_strided_slice %19 {offsets = [0, 32], sizes = [8, 32], strides = [1, 1]} : vector<8x128xf32> to vector<8x32xf32>
    %27 = arith.negf %26 : vector<8x32xf32>
    %28 = math.exp %27 : vector<8x32xf32>
    %cst_20 = arith.constant 1.000000e+00 : f32
    %29 = vector.broadcast %cst_20 : f32 to vector<8x32xf32>
    %30 = arith.addf %29, %28 : vector<8x32xf32>
    %31 = arith.divf %29, %30 : vector<8x32xf32>
    %32 = vector.extract_strided_slice %19 {offsets = [0, 64], sizes = [8, 32], strides = [1, 1]} : vector<8x128xf32> to vector<8x32xf32>
    %33 = math.tanh %32 : vector<8x32xf32>
    %34 = vector.extract_strided_slice %19 {offsets = [0, 96], sizes = [8, 32], strides = [1, 1]} : vector<8x128xf32> to vector<8x32xf32>
    %35 = arith.negf %34 : vector<8x32xf32>
    %36 = math.exp %35 : vector<8x32xf32>
    %cst_21 = arith.constant 1.000000e+00 : f32
    %37 = vector.broadcast %cst_21 : f32 to vector<8x32xf32>
    %38 = arith.addf %37, %36 : vector<8x32xf32>
    %39 = arith.divf %37, %38 : vector<8x32xf32>
    %40 = arith.mulf %31, %5 : vector<8x32xf32>
    %41 = arith.mulf %25, %33 : vector<8x32xf32>
    %42 = arith.addf %40, %41 : vector<8x32xf32>
    %43 = math.tanh %42 : vector<8x32xf32>
    %44 = arith.mulf %39, %43 : vector<8x32xf32>
    %cst_22 = arith.constant dense<0.000000e+00> : vector<8x128xf32>
    %45 = tpu.matmul %44, %12, %cst_22 {dimension_numbers = #tpu.dot_dimension_numbers<[1], [0], [0], [1], [0, 0, 1, 1], [], []>} : vector<8x32xf32>, vector<32x128xf32>, vector<8x128xf32> -> vector<8x128xf32>
    %46 = vector.broadcast %13 : vector<1x128xf32> to vector<8x128xf32>
    %47 = arith.addf %45, %46 : vector<8x128xf32>
    %48 = vector.extract_strided_slice %47 {offsets = [0, 0], sizes = [8, 32], strides = [1, 1]} : vector<8x128xf32> to vector<8x32xf32>
    %49 = arith.negf %48 : vector<8x32xf32>
    %50 = math.exp %49 : vector<8x32xf32>
    %cst_23 = arith.constant 1.000000e+00 : f32
    %51 = vector.broadcast %cst_23 : f32 to vector<8x32xf32>
    %52 = arith.addf %51, %50 : vector<8x32xf32>
    %53 = arith.divf %51, %52 : vector<8x32xf32>
    %54 = vector.extract_strided_slice %47 {offsets = [0, 32], sizes = [8, 32], strides = [1, 1]} : vector<8x128xf32> to vector<8x32xf32>
    %55 = arith.negf %54 : vector<8x32xf32>
    %56 = math.exp %55 : vector<8x32xf32>
    %cst_24 = arith.constant 1.000000e+00 : f32
    %57 = vector.broadcast %cst_24 : f32 to vector<8x32xf32>
    %58 = arith.addf %57, %56 : vector<8x32xf32>
    %59 = arith.divf %57, %58 : vector<8x32xf32>
    %60 = vector.extract_strided_slice %47 {offsets = [0, 64], sizes = [8, 32], strides = [1, 1]} : vector<8x128xf32> to vector<8x32xf32>
    %61 = math.tanh %60 : vector<8x32xf32>
    %62 = vector.extract_strided_slice %47 {offsets = [0, 96], sizes = [8, 32], strides = [1, 1]} : vector<8x128xf32> to vector<8x32xf32>
    %63 = arith.negf %62 : vector<8x32xf32>
    %64 = math.exp %63 : vector<8x32xf32>
    %cst_25 = arith.constant 1.000000e+00 : f32
    %65 = vector.broadcast %cst_25 : f32 to vector<8x32xf32>
    %66 = arith.addf %65, %64 : vector<8x32xf32>
    %67 = arith.divf %65, %66 : vector<8x32xf32>
    %68 = arith.mulf %59, %42 : vector<8x32xf32>
    %69 = arith.mulf %53, %61 : vector<8x32xf32>
    %70 = arith.addf %68, %69 : vector<8x32xf32>
    %71 = math.tanh %70 : vector<8x32xf32>
    %72 = arith.mulf %67, %71 : vector<8x32xf32>
    %c8_i32 = arith.constant 8 : i32
    %73 = arith.muli %c0_i32, %c8_i32 : i32
    %74 = tpu.assume_multiple %73, 8 : i32
    %75 = arith.index_cast %74 : i32 to index
    %c0_26 = arith.constant 0 : index
    %76 = vector.load %arg13[%75, %c0_26] : memref<64x32xf32, #tpu.memory_space<vmem>>, vector<8x32xf32>
    tpu.vector_store %arg13[%75, %c0_26], %72 {strides = array<i32>} : memref<64x32xf32, #tpu.memory_space<vmem>>, vector<8x32xf32>,
    %c1_i32 = arith.constant 1 : i32
    %77 = arith.index_cast %c1_i32 : i32 to index
    %c0_27 = arith.constant 0 : index
    %c0_28 = arith.constant 0 : index
    %78 = vector.load %arg2[%77, %c0_27, %c0_28] : memref<8x8x32xf32, #tpu.memory_space<vmem>>, vector<1x8x32xf32>
    %79 = vector.shape_cast %78 : vector<1x8x32xf32> to vector<8x32xf32>
    %80 = tpu.concatenate %79, %72 in 1 : vector<8x32xf32>, vector<8x32xf32> -> vector<8x64xf32>
    %cst_29 = arith.constant dense<0.000000e+00> : vector<8x128xf32>
    %81 = tpu.matmul %80, %11, %cst_29 {dimension_numbers = #tpu.dot_dimension_numbers<[1], [0], [0], [1], [0, 0, 1, 1], [], []>} : vector<8x64xf32>, vector<64x128xf32>, vector<8x128xf32> -> vector<8x128xf32>
    %82 = arith.addf %81, %10 : vector<8x128xf32>
    %83 = vector.extract_strided_slice %82 {offsets = [0, 0], sizes = [8, 32], strides = [1, 1]} : vector<8x128xf32> to vector<8x32xf32>
    %84 = arith.negf %83 : vector<8x32xf32>
    %85 = math.exp %84 : vector<8x32xf32>
    %cst_30 = arith.constant 1.000000e+00 : f32
    %86 = vector.broadcast %cst_30 : f32 to vector<8x32xf32>
    %87 = arith.addf %86, %85 : vector<8x32xf32>
    %88 = arith.divf %86, %87 : vector<8x32xf32>
    %89 = vector.extract_strided_slice %82 {offsets = [0, 32], sizes = [8, 32], strides = [1, 1]} : vector<8x128xf32> to vector<8x32xf32>
    %90 = arith.negf %89 : vector<8x32xf32>
    %91 = math.exp %90 : vector<8x32xf32>
    %cst_31 = arith.constant 1.000000e+00 : f32
    %92 = vector.broadcast %cst_31 : f32 to vector<8x32xf32>
    %93 = arith.addf %92, %91 : vector<8x32xf32>
    %94 = arith.divf %92, %93 : vector<8x32xf32>
    %95 = vector.extract_strided_slice %82 {offsets = [0, 64], sizes = [8, 32], strides = [1, 1]} : vector<8x128xf32> to vector<8x32xf32>
    %96 = math.tanh %95 : vector<8x32xf32>
    %97 = vector.extract_strided_slice %82 {offsets = [0, 96], sizes = [8, 32], strides = [1, 1]} : vector<8x128xf32> to vector<8x32xf32>
    %98 = arith.negf %97 : vector<8x32xf32>
    %99 = math.exp %98 : vector<8x32xf32>
    %cst_32 = arith.constant 1.000000e+00 : f32
    %100 = vector.broadcast %cst_32 : f32 to vector<8x32xf32>
    %101 = arith.addf %100, %99 : vector<8x32xf32>
    %102 = arith.divf %100, %101 : vector<8x32xf32>
    %103 = arith.mulf %94, %70 : vector<8x32xf32>
    %104 = arith.mulf %88, %96 : vector<8x32xf32>
    %105 = arith.addf %103, %104 : vector<8x32xf32>
    %106 = math.tanh %105 : vector<8x32xf32>
    %107 = arith.mulf %102, %106 : vector<8x32xf32>
    %cst_33 = arith.constant dense<0.000000e+00> : vector<8x128xf32>
    %108 = tpu.matmul %107, %12, %cst_33 {dimension_numbers = #tpu.dot_dimension_numbers<[1], [0], [0], [1], [0, 0, 1, 1], [], []>} : vector<8x32xf32>, vector<32x128xf32>, vector<8x128xf32> -> vector<8x128xf32>
    %109 = vector.broadcast %13 : vector<1x128xf32> to vector<8x128xf32>
    %110 = arith.addf %108, %109 : vector<8x128xf32>
    %111 = vector.extract_strided_slice %110 {offsets = [0, 0], sizes = [8, 32], strides = [1, 1]} : vector<8x128xf32> to vector<8x32xf32>
    %112 = arith.negf %111 : vector<8x32xf32>
    %113 = math.exp %112 : vector<8x32xf32>
    %cst_34 = arith.constant 1.000000e+00 : f32
    %114 = vector.broadcast %cst_34 : f32 to vector<8x32xf32>
    %115 = arith.addf %114, %113 : vector<8x32xf32>
    %116 = arith.divf %114, %115 : vector<8x32xf32>
    %117 = vector.extract_strided_slice %110 {offsets = [0, 32], sizes = [8, 32], strides = [1, 1]} : vector<8x128xf32> to vector<8x32xf32>
    %118 = arith.negf %117 : vector<8x32xf32>
    %119 = math.exp %118 : vector<8x32xf32>
    %cst_35 = arith.constant 1.000000e+00 : f32
    %120 = vector.broadcast %cst_35 : f32 to vector<8x32xf32>
    %121 = arith.addf %120, %119 : vector<8x32xf32>
    %122 = arith.divf %120, %121 : vector<8x32xf32>
    %123 = vector.extract_strided_slice %110 {offsets = [0, 64], sizes = [8, 32], strides = [1, 1]} : vector<8x128xf32> to vector<8x32xf32>
    %124 = math.tanh %123 : vector<8x32xf32>
    %125 = vector.extract_strided_slice %110 {offsets = [0, 96], sizes = [8, 32], strides = [1, 1]} : vector<8x128xf32> to vector<8x32xf32>
    %126 = arith.negf %125 : vector<8x32xf32>
    %127 = math.exp %126 : vector<8x32xf32>
    %cst_36 = arith.constant 1.000000e+00 : f32
    %128 = vector.broadcast %cst_36 : f32 to vector<8x32xf32>
    %129 = arith.addf %128, %127 : vector<8x32xf32>
    %130 = arith.divf %128, %129 : vector<8x32xf32>
    %131 = arith.mulf %122, %105 : vector<8x32xf32>
    %132 = arith.mulf %116, %124 : vector<8x32xf32>
    %133 = arith.addf %131, %132 : vector<8x32xf32>
    %134 = math.tanh %133 : vector<8x32xf32>
    %135 = arith.mulf %130, %134 : vector<8x32xf32>
    %c8_i32_37 = arith.constant 8 : i32
    %136 = arith.muli %c1_i32, %c8_i32_37 : i32
    %137 = tpu.assume_multiple %136, 8 : i32
    %138 = arith.index_cast %137 : i32 to index
    %c0_38 = arith.constant 0 : index
    %139 = vector.load %arg13[%138, %c0_38] : memref<64x32xf32, #tpu.memory_space<vmem>>, vector<8x32xf32>
    tpu.vector_store %arg13[%138, %c0_38], %135 {strides = array<i32>} : memref<64x32xf32, #tpu.memory_space<vmem>>, vector<8x32xf32>,
    %c2_i32 = arith.constant 2 : i32
    %140 = arith.index_cast %c2_i32 : i32 to index
    %c0_39 = arith.constant 0 : index
    %c0_40 = arith.constant 0 : index
    %141 = vector.load %arg2[%140, %c0_39, %c0_40] : memref<8x8x32xf32, #tpu.memory_space<vmem>>, vector<1x8x32xf32>
    %142 = vector.shape_cast %141 : vector<1x8x32xf32> to vector<8x32xf32>
    %143 = tpu.concatenate %142, %135 in 1 : vector<8x32xf32>, vector<8x32xf32> -> vector<8x64xf32>
    %cst_41 = arith.constant dense<0.000000e+00> : vector<8x128xf32>
    %144 = tpu.matmul %143, %11, %cst_41 {dimension_numbers = #tpu.dot_dimension_numbers<[1], [0], [0], [1], [0, 0, 1, 1], [], []>} : vector<8x64xf32>, vector<64x128xf32>, vector<8x128xf32> -> vector<8x128xf32>
    %145 = arith.addf %144, %10 : vector<8x128xf32>
    %146 = vector.extract_strided_slice %145 {offsets = [0, 0], sizes = [8, 32], strides = [1, 1]} : vector<8x128xf32> to vector<8x32xf32>
    %147 = arith.negf %146 : vector<8x32xf32>
    %148 = math.exp %147 : vector<8x32xf32>
    %cst_42 = arith.constant 1.000000e+00 : f32
    %149 = vector.broadcast %cst_42 : f32 to vector<8x32xf32>
    %150 = arith.addf %149, %148 : vector<8x32xf32>
    %151 = arith.divf %149, %150 : vector<8x32xf32>
    %152 = vector.extract_strided_slice %145 {offsets = [0, 32], sizes = [8, 32], strides = [1, 1]} : vector<8x128xf32> to vector<8x32xf32>
    %153 = arith.negf %152 : vector<8x32xf32>
    %154 = math.exp %153 : vector<8x32xf32>
    %cst_43 = arith.constant 1.000000e+00 : f32
    %155 = vector.broadcast %cst_43 : f32 to vector<8x32xf32>
    %156 = arith.addf %155, %154 : vector<8x32xf32>
    %157 = arith.divf %155, %156 : vector<8x32xf32>
    %158 = vector.extract_strided_slice %145 {offsets = [0, 64], sizes = [8, 32], strides = [1, 1]} : vector<8x128xf32> to vector<8x32xf32>
    %159 = math.tanh %158 : vector<8x32xf32>
    %160 = vector.extract_strided_slice %145 {offsets = [0, 96], sizes = [8, 32], strides = [1, 1]} : vector<8x128xf32> to vector<8x32xf32>
    %161 = arith.negf %160 : vector<8x32xf32>
    %162 = math.exp %161 : vector<8x32xf32>
    %cst_44 = arith.constant 1.000000e+00 : f32
    %163 = vector.broadcast %cst_44 : f32 to vector<8x32xf32>
    %164 = arith.addf %163, %162 : vector<8x32xf32>
    %165 = arith.divf %163, %164 : vector<8x32xf32>
    %166 = arith.mulf %157, %133 : vector<8x32xf32>
    %167 = arith.mulf %151, %159 : vector<8x32xf32>
    %168 = arith.addf %166, %167 : vector<8x32xf32>
    %169 = math.tanh %168 : vector<8x32xf32>
    %170 = arith.mulf %165, %169 : vector<8x32xf32>
    %cst_45 = arith.constant dense<0.000000e+00> : vector<8x128xf32>
    %171 = tpu.matmul %170, %12, %cst_45 {dimension_numbers = #tpu.dot_dimension_numbers<[1], [0], [0], [1], [0, 0, 1, 1], [], []>} : vector<8x32xf32>, vector<32x128xf32>, vector<8x128xf32> -> vector<8x128xf32>
    %172 = vector.broadcast %13 : vector<1x128xf32> to vector<8x128xf32>
    %173 = arith.addf %171, %172 : vector<8x128xf32>
    %174 = vector.extract_strided_slice %173 {offsets = [0, 0], sizes = [8, 32], strides = [1, 1]} : vector<8x128xf32> to vector<8x32xf32>
    %175 = arith.negf %174 : vector<8x32xf32>
    %176 = math.exp %175 : vector<8x32xf32>
    %cst_46 = arith.constant 1.000000e+00 : f32
    %177 = vector.broadcast %cst_46 : f32 to vector<8x32xf32>
    %178 = arith.addf %177, %176 : vector<8x32xf32>
    %179 = arith.divf %177, %178 : vector<8x32xf32>
    %180 = vector.extract_strided_slice %173 {offsets = [0, 32], sizes = [8, 32], strides = [1, 1]} : vector<8x128xf32> to vector<8x32xf32>
    %181 = arith.negf %180 : vector<8x32xf32>
    %182 = math.exp %181 : vector<8x32xf32>
    %cst_47 = arith.constant 1.000000e+00 : f32
    %183 = vector.broadcast %cst_47 : f32 to vector<8x32xf32>
    %184 = arith.addf %183, %182 : vector<8x32xf32>
    %185 = arith.divf %183, %184 : vector<8x32xf32>
    %186 = vector.extract_strided_slice %173 {offsets = [0, 64], sizes = [8, 32], strides = [1, 1]} : vector<8x128xf32> to vector<8x32xf32>
    %187 = math.tanh %186 : vector<8x32xf32>
    %188 = vector.extract_strided_slice %173 {offsets = [0, 96], sizes = [8, 32], strides = [1, 1]} : vector<8x128xf32> to vector<8x32xf32>
    %189 = arith.negf %188 : vector<8x32xf32>
    %190 = math.exp %189 : vector<8x32xf32>
    %cst_48 = arith.constant 1.000000e+00 : f32
    %191 = vector.broadcast %cst_48 : f32 to vector<8x32xf32>
    %192 = arith.addf %191, %190 : vector<8x32xf32>
    %193 = arith.divf %191, %192 : vector<8x32xf32>
    %194 = arith.mulf %185, %168 : vector<8x32xf32>
    %195 = arith.mulf %179, %187 : vector<8x32xf32>
    %196 = arith.addf %194, %195 : vector<8x32xf32>
    %197 = math.tanh %196 : vector<8x32xf32>
    %198 = arith.mulf %193, %197 : vector<8x32xf32>
    %c8_i32_49 = arith.constant 8 : i32
    %199 = arith.muli %c2_i32, %c8_i32_49 : i32
    %200 = tpu.assume_multiple %199, 8 : i32
    %201 = arith.index_cast %200 : i32 to index
    %c0_50 = arith.constant 0 : index
    %202 = vector.load %arg13[%201, %c0_50] : memref<64x32xf32, #tpu.memory_space<vmem>>, vector<8x32xf32>
    tpu.vector_store %arg13[%201, %c0_50], %198 {strides = array<i32>} : memref<64x32xf32, #tpu.memory_space<vmem>>, vector<8x32xf32>,
    %c3_i32 = arith.constant 3 : i32
    %203 = arith.index_cast %c3_i32 : i32 to index
    %c0_51 = arith.constant 0 : index
    %c0_52 = arith.constant 0 : index
    %204 = vector.load %arg2[%203, %c0_51, %c0_52] : memref<8x8x32xf32, #tpu.memory_space<vmem>>, vector<1x8x32xf32>
    %205 = vector.shape_cast %204 : vector<1x8x32xf32> to vector<8x32xf32>
    %206 = tpu.concatenate %205, %198 in 1 : vector<8x32xf32>, vector<8x32xf32> -> vector<8x64xf32>
    %cst_53 = arith.constant dense<0.000000e+00> : vector<8x128xf32>
    %207 = tpu.matmul %206, %11, %cst_53 {dimension_numbers = #tpu.dot_dimension_numbers<[1], [0], [0], [1], [0, 0, 1, 1], [], []>} : vector<8x64xf32>, vector<64x128xf32>, vector<8x128xf32> -> vector<8x128xf32>
    %208 = arith.addf %207, %10 : vector<8x128xf32>
    %209 = vector.extract_strided_slice %208 {offsets = [0, 0], sizes = [8, 32], strides = [1, 1]} : vector<8x128xf32> to vector<8x32xf32>
    %210 = arith.negf %209 : vector<8x32xf32>
    %211 = math.exp %210 : vector<8x32xf32>
    %cst_54 = arith.constant 1.000000e+00 : f32
    %212 = vector.broadcast %cst_54 : f32 to vector<8x32xf32>
    %213 = arith.addf %212, %211 : vector<8x32xf32>
    %214 = arith.divf %212, %213 : vector<8x32xf32>
    %215 = vector.extract_strided_slice %208 {offsets = [0, 32], sizes = [8, 32], strides = [1, 1]} : vector<8x128xf32> to vector<8x32xf32>
    %216 = arith.negf %215 : vector<8x32xf32>
    %217 = math.exp %216 : vector<8x32xf32>
    %cst_55 = arith.constant 1.000000e+00 : f32
    %218 = vector.broadcast %cst_55 : f32 to vector<8x32xf32>
    %219 = arith.addf %218, %217 : vector<8x32xf32>
    %220 = arith.divf %218, %219 : vector<8x32xf32>
    %221 = vector.extract_strided_slice %208 {offsets = [0, 64], sizes = [8, 32], strides = [1, 1]} : vector<8x128xf32> to vector<8x32xf32>
    %222 = math.tanh %221 : vector<8x32xf32>
    %223 = vector.extract_strided_slice %208 {offsets = [0, 96], sizes = [8, 32], strides = [1, 1]} : vector<8x128xf32> to vector<8x32xf32>
    %224 = arith.negf %223 : vector<8x32xf32>
    %225 = math.exp %224 : vector<8x32xf32>
    %cst_56 = arith.constant 1.000000e+00 : f32
    %226 = vector.broadcast %cst_56 : f32 to vector<8x32xf32>
    %227 = arith.addf %226, %225 : vector<8x32xf32>
    %228 = arith.divf %226, %227 : vector<8x32xf32>
    %229 = arith.mulf %220, %196 : vector<8x32xf32>
    %230 = arith.mulf %214, %222 : vector<8x32xf32>
    %231 = arith.addf %229, %230 : vector<8x32xf32>
    %232 = math.tanh %231 : vector<8x32xf32>
    %233 = arith.mulf %228, %232 : vector<8x32xf32>
    %cst_57 = arith.constant dense<0.000000e+00> : vector<8x128xf32>
    %234 = tpu.matmul %233, %12, %cst_57 {dimension_numbers = #tpu.dot_dimension_numbers<[1], [0], [0], [1], [0, 0, 1, 1], [], []>} : vector<8x32xf32>, vector<32x128xf32>, vector<8x128xf32> -> vector<8x128xf32>
    %235 = vector.broadcast %13 : vector<1x128xf32> to vector<8x128xf32>
    %236 = arith.addf %234, %235 : vector<8x128xf32>
    %237 = vector.extract_strided_slice %236 {offsets = [0, 0], sizes = [8, 32], strides = [1, 1]} : vector<8x128xf32> to vector<8x32xf32>
    %238 = arith.negf %237 : vector<8x32xf32>
    %239 = math.exp %238 : vector<8x32xf32>
    %cst_58 = arith.constant 1.000000e+00 : f32
    %240 = vector.broadcast %cst_58 : f32 to vector<8x32xf32>
    %241 = arith.addf %240, %239 : vector<8x32xf32>
    %242 = arith.divf %240, %241 : vector<8x32xf32>
    %243 = vector.extract_strided_slice %236 {offsets = [0, 32], sizes = [8, 32], strides = [1, 1]} : vector<8x128xf32> to vector<8x32xf32>
    %244 = arith.negf %243 : vector<8x32xf32>
    %245 = math.exp %244 : vector<8x32xf32>
    %cst_59 = arith.constant 1.000000e+00 : f32
    %246 = vector.broadcast %cst_59 : f32 to vector<8x32xf32>
    %247 = arith.addf %246, %245 : vector<8x32xf32>
    %248 = arith.divf %246, %247 : vector<8x32xf32>
    %249 = vector.extract_strided_slice %236 {offsets = [0, 64], sizes = [8, 32], strides = [1, 1]} : vector<8x128xf32> to vector<8x32xf32>
    %250 = math.tanh %249 : vector<8x32xf32>
    %251 = vector.extract_strided_slice %236 {offsets = [0, 96], sizes = [8, 32], strides = [1, 1]} : vector<8x128xf32> to vector<8x32xf32>
    %252 = arith.negf %251 : vector<8x32xf32>
    %253 = math.exp %252 : vector<8x32xf32>
    %cst_60 = arith.constant 1.000000e+00 : f32
    %254 = vector.broadcast %cst_60 : f32 to vector<8x32xf32>
    %255 = arith.addf %254, %253 : vector<8x32xf32>
    %256 = arith.divf %254, %255 : vector<8x32xf32>
    %257 = arith.mulf %248, %231 : vector<8x32xf32>
    %258 = arith.mulf %242, %250 : vector<8x32xf32>
    %259 = arith.addf %257, %258 : vector<8x32xf32>
    %260 = math.tanh %259 : vector<8x32xf32>
    %261 = arith.mulf %256, %260 : vector<8x32xf32>
    %c8_i32_61 = arith.constant 8 : i32
    %262 = arith.muli %c3_i32, %c8_i32_61 : i32
    %263 = tpu.assume_multiple %262, 8 : i32
    %264 = arith.index_cast %263 : i32 to index
    %c0_62 = arith.constant 0 : index
    %265 = vector.load %arg13[%264, %c0_62] : memref<64x32xf32, #tpu.memory_space<vmem>>, vector<8x32xf32>
    tpu.vector_store %arg13[%264, %c0_62], %261 {strides = array<i32>} : memref<64x32xf32, #tpu.memory_space<vmem>>, vector<8x32xf32>,
    %c4_i32 = arith.constant 4 : i32
    %266 = arith.index_cast %c4_i32 : i32 to index
    %c0_63 = arith.constant 0 : index
    %c0_64 = arith.constant 0 : index
    %267 = vector.load %arg2[%266, %c0_63, %c0_64] : memref<8x8x32xf32, #tpu.memory_space<vmem>>, vector<1x8x32xf32>
    %268 = vector.shape_cast %267 : vector<1x8x32xf32> to vector<8x32xf32>
    %269 = tpu.concatenate %268, %261 in 1 : vector<8x32xf32>, vector<8x32xf32> -> vector<8x64xf32>
    %cst_65 = arith.constant dense<0.000000e+00> : vector<8x128xf32>
    %270 = tpu.matmul %269, %11, %cst_65 {dimension_numbers = #tpu.dot_dimension_numbers<[1], [0], [0], [1], [0, 0, 1, 1], [], []>} : vector<8x64xf32>, vector<64x128xf32>, vector<8x128xf32> -> vector<8x128xf32>
    %271 = arith.addf %270, %10 : vector<8x128xf32>
    %272 = vector.extract_strided_slice %271 {offsets = [0, 0], sizes = [8, 32], strides = [1, 1]} : vector<8x128xf32> to vector<8x32xf32>
    %273 = arith.negf %272 : vector<8x32xf32>
    %274 = math.exp %273 : vector<8x32xf32>
    %cst_66 = arith.constant 1.000000e+00 : f32
    %275 = vector.broadcast %cst_66 : f32 to vector<8x32xf32>
    %276 = arith.addf %275, %274 : vector<8x32xf32>
    %277 = arith.divf %275, %276 : vector<8x32xf32>
    %278 = vector.extract_strided_slice %271 {offsets = [0, 32], sizes = [8, 32], strides = [1, 1]} : vector<8x128xf32> to vector<8x32xf32>
    %279 = arith.negf %278 : vector<8x32xf32>
    %280 = math.exp %279 : vector<8x32xf32>
    %cst_67 = arith.constant 1.000000e+00 : f32
    %281 = vector.broadcast %cst_67 : f32 to vector<8x32xf32>
    %282 = arith.addf %281, %280 : vector<8x32xf32>
    %283 = arith.divf %281, %282 : vector<8x32xf32>
    %284 = vector.extract_strided_slice %271 {offsets = [0, 64], sizes = [8, 32], strides = [1, 1]} : vector<8x128xf32> to vector<8x32xf32>
    %285 = math.tanh %284 : vector<8x32xf32>
    %286 = vector.extract_strided_slice %271 {offsets = [0, 96], sizes = [8, 32], strides = [1, 1]} : vector<8x128xf32> to vector<8x32xf32>
    %287 = arith.negf %286 : vector<8x32xf32>
    %288 = math.exp %287 : vector<8x32xf32>
    %cst_68 = arith.constant 1.000000e+00 : f32
    %289 = vector.broadcast %cst_68 : f32 to vector<8x32xf32>
    %290 = arith.addf %289, %288 : vector<8x32xf32>
    %291 = arith.divf %289, %290 : vector<8x32xf32>
    %292 = arith.mulf %283, %259 : vector<8x32xf32>
    %293 = arith.mulf %277, %285 : vector<8x32xf32>
    %294 = arith.addf %292, %293 : vector<8x32xf32>
    %295 = math.tanh %294 : vector<8x32xf32>
    %296 = arith.mulf %291, %295 : vector<8x32xf32>
    %cst_69 = arith.constant dense<0.000000e+00> : vector<8x128xf32>
    %297 = tpu.matmul %296, %12, %cst_69 {dimension_numbers = #tpu.dot_dimension_numbers<[1], [0], [0], [1], [0, 0, 1, 1], [], []>} : vector<8x32xf32>, vector<32x128xf32>, vector<8x128xf32> -> vector<8x128xf32>
    %298 = vector.broadcast %13 : vector<1x128xf32> to vector<8x128xf32>
    %299 = arith.addf %297, %298 : vector<8x128xf32>
    %300 = vector.extract_strided_slice %299 {offsets = [0, 0], sizes = [8, 32], strides = [1, 1]} : vector<8x128xf32> to vector<8x32xf32>
    %301 = arith.negf %300 : vector<8x32xf32>
    %302 = math.exp %301 : vector<8x32xf32>
    %cst_70 = arith.constant 1.000000e+00 : f32
    %303 = vector.broadcast %cst_70 : f32 to vector<8x32xf32>
    %304 = arith.addf %303, %302 : vector<8x32xf32>
    %305 = arith.divf %303, %304 : vector<8x32xf32>
    %306 = vector.extract_strided_slice %299 {offsets = [0, 32], sizes = [8, 32], strides = [1, 1]} : vector<8x128xf32> to vector<8x32xf32>
    %307 = arith.negf %306 : vector<8x32xf32>
    %308 = math.exp %307 : vector<8x32xf32>
    %cst_71 = arith.constant 1.000000e+00 : f32
    %309 = vector.broadcast %cst_71 : f32 to vector<8x32xf32>
    %310 = arith.addf %309, %308 : vector<8x32xf32>
    %311 = arith.divf %309, %310 : vector<8x32xf32>
    %312 = vector.extract_strided_slice %299 {offsets = [0, 64], sizes = [8, 32], strides = [1, 1]} : vector<8x128xf32> to vector<8x32xf32>
    %313 = math.tanh %312 : vector<8x32xf32>
    %314 = vector.extract_strided_slice %299 {offsets = [0, 96], sizes = [8, 32], strides = [1, 1]} : vector<8x128xf32> to vector<8x32xf32>
    %315 = arith.negf %314 : vector<8x32xf32>
    %316 = math.exp %315 : vector<8x32xf32>
    %cst_72 = arith.constant 1.000000e+00 : f32
    %317 = vector.broadcast %cst_72 : f32 to vector<8x32xf32>
    %318 = arith.addf %317, %316 : vector<8x32xf32>
    %319 = arith.divf %317, %318 : vector<8x32xf32>
    %320 = arith.mulf %311, %294 : vector<8x32xf32>
    %321 = arith.mulf %305, %313 : vector<8x32xf32>
    %322 = arith.addf %320, %321 : vector<8x32xf32>
    %323 = math.tanh %322 : vector<8x32xf32>
    %324 = arith.mulf %319, %323 : vector<8x32xf32>
    %c8_i32_73 = arith.constant 8 : i32
    %325 = arith.muli %c4_i32, %c8_i32_73 : i32
    %326 = tpu.assume_multiple %325, 8 : i32
    %327 = arith.index_cast %326 : i32 to index
    %c0_74 = arith.constant 0 : index
    %328 = vector.load %arg13[%327, %c0_74] : memref<64x32xf32, #tpu.memory_space<vmem>>, vector<8x32xf32>
    tpu.vector_store %arg13[%327, %c0_74], %324 {strides = array<i32>} : memref<64x32xf32, #tpu.memory_space<vmem>>, vector<8x32xf32>,
    %c5_i32 = arith.constant 5 : i32
    %329 = arith.index_cast %c5_i32 : i32 to index
    %c0_75 = arith.constant 0 : index
    %c0_76 = arith.constant 0 : index
    %330 = vector.load %arg2[%329, %c0_75, %c0_76] : memref<8x8x32xf32, #tpu.memory_space<vmem>>, vector<1x8x32xf32>
    %331 = vector.shape_cast %330 : vector<1x8x32xf32> to vector<8x32xf32>
    %332 = tpu.concatenate %331, %324 in 1 : vector<8x32xf32>, vector<8x32xf32> -> vector<8x64xf32>
    %cst_77 = arith.constant dense<0.000000e+00> : vector<8x128xf32>
    %333 = tpu.matmul %332, %11, %cst_77 {dimension_numbers = #tpu.dot_dimension_numbers<[1], [0], [0], [1], [0, 0, 1, 1], [], []>} : vector<8x64xf32>, vector<64x128xf32>, vector<8x128xf32> -> vector<8x128xf32>
    %334 = arith.addf %333, %10 : vector<8x128xf32>
    %335 = vector.extract_strided_slice %334 {offsets = [0, 0], sizes = [8, 32], strides = [1, 1]} : vector<8x128xf32> to vector<8x32xf32>
    %336 = arith.negf %335 : vector<8x32xf32>
    %337 = math.exp %336 : vector<8x32xf32>
    %cst_78 = arith.constant 1.000000e+00 : f32
    %338 = vector.broadcast %cst_78 : f32 to vector<8x32xf32>
    %339 = arith.addf %338, %337 : vector<8x32xf32>
    %340 = arith.divf %338, %339 : vector<8x32xf32>
    %341 = vector.extract_strided_slice %334 {offsets = [0, 32], sizes = [8, 32], strides = [1, 1]} : vector<8x128xf32> to vector<8x32xf32>
    %342 = arith.negf %341 : vector<8x32xf32>
    %343 = math.exp %342 : vector<8x32xf32>
    %cst_79 = arith.constant 1.000000e+00 : f32
    %344 = vector.broadcast %cst_79 : f32 to vector<8x32xf32>
    %345 = arith.addf %344, %343 : vector<8x32xf32>
    %346 = arith.divf %344, %345 : vector<8x32xf32>
    %347 = vector.extract_strided_slice %334 {offsets = [0, 64], sizes = [8, 32], strides = [1, 1]} : vector<8x128xf32> to vector<8x32xf32>
    %348 = math.tanh %347 : vector<8x32xf32>
    %349 = vector.extract_strided_slice %334 {offsets = [0, 96], sizes = [8, 32], strides = [1, 1]} : vector<8x128xf32> to vector<8x32xf32>
    %350 = arith.negf %349 : vector<8x32xf32>
    %351 = math.exp %350 : vector<8x32xf32>
    %cst_80 = arith.constant 1.000000e+00 : f32
    %352 = vector.broadcast %cst_80 : f32 to vector<8x32xf32>
    %353 = arith.addf %352, %351 : vector<8x32xf32>
    %354 = arith.divf %352, %353 : vector<8x32xf32>
    %355 = arith.mulf %346, %322 : vector<8x32xf32>
    %356 = arith.mulf %340, %348 : vector<8x32xf32>
    %357 = arith.addf %355, %356 : vector<8x32xf32>
    %358 = math.tanh %357 : vector<8x32xf32>
    %359 = arith.mulf %354, %358 : vector<8x32xf32>
    %cst_81 = arith.constant dense<0.000000e+00> : vector<8x128xf32>
    %360 = tpu.matmul %359, %12, %cst_81 {dimension_numbers = #tpu.dot_dimension_numbers<[1], [0], [0], [1], [0, 0, 1, 1], [], []>} : vector<8x32xf32>, vector<32x128xf32>, vector<8x128xf32> -> vector<8x128xf32>
    %361 = vector.broadcast %13 : vector<1x128xf32> to vector<8x128xf32>
    %362 = arith.addf %360, %361 : vector<8x128xf32>
    %363 = vector.extract_strided_slice %362 {offsets = [0, 0], sizes = [8, 32], strides = [1, 1]} : vector<8x128xf32> to vector<8x32xf32>
    %364 = arith.negf %363 : vector<8x32xf32>
    %365 = math.exp %364 : vector<8x32xf32>
    %cst_82 = arith.constant 1.000000e+00 : f32
    %366 = vector.broadcast %cst_82 : f32 to vector<8x32xf32>
    %367 = arith.addf %366, %365 : vector<8x32xf32>
    %368 = arith.divf %366, %367 : vector<8x32xf32>
    %369 = vector.extract_strided_slice %362 {offsets = [0, 32], sizes = [8, 32], strides = [1, 1]} : vector<8x128xf32> to vector<8x32xf32>
    %370 = arith.negf %369 : vector<8x32xf32>
    %371 = math.exp %370 : vector<8x32xf32>
    %cst_83 = arith.constant 1.000000e+00 : f32
    %372 = vector.broadcast %cst_83 : f32 to vector<8x32xf32>
    %373 = arith.addf %372, %371 : vector<8x32xf32>
    %374 = arith.divf %372, %373 : vector<8x32xf32>
    %375 = vector.extract_strided_slice %362 {offsets = [0, 64], sizes = [8, 32], strides = [1, 1]} : vector<8x128xf32> to vector<8x32xf32>
    %376 = math.tanh %375 : vector<8x32xf32>
    %377 = vector.extract_strided_slice %362 {offsets = [0, 96], sizes = [8, 32], strides = [1, 1]} : vector<8x128xf32> to vector<8x32xf32>
    %378 = arith.negf %377 : vector<8x32xf32>
    %379 = math.exp %378 : vector<8x32xf32>
    %cst_84 = arith.constant 1.000000e+00 : f32
    %380 = vector.broadcast %cst_84 : f32 to vector<8x32xf32>
    %381 = arith.addf %380, %379 : vector<8x32xf32>
    %382 = arith.divf %380, %381 : vector<8x32xf32>
    %383 = arith.mulf %374, %357 : vector<8x32xf32>
    %384 = arith.mulf %368, %376 : vector<8x32xf32>
    %385 = arith.addf %383, %384 : vector<8x32xf32>
    %386 = math.tanh %385 : vector<8x32xf32>
    %387 = arith.mulf %382, %386 : vector<8x32xf32>
    %c8_i32_85 = arith.constant 8 : i32
    %388 = arith.muli %c5_i32, %c8_i32_85 : i32
    %389 = tpu.assume_multiple %388, 8 : i32
    %390 = arith.index_cast %389 : i32 to index
    %c0_86 = arith.constant 0 : index
    %391 = vector.load %arg13[%390, %c0_86] : memref<64x32xf32, #tpu.memory_space<vmem>>, vector<8x32xf32>
    tpu.vector_store %arg13[%390, %c0_86], %387 {strides = array<i32>} : memref<64x32xf32, #tpu.memory_space<vmem>>, vector<8x32xf32>,
    %c6_i32 = arith.constant 6 : i32
    %392 = arith.index_cast %c6_i32 : i32 to index
    %c0_87 = arith.constant 0 : index
    %c0_88 = arith.constant 0 : index
    %393 = vector.load %arg2[%392, %c0_87, %c0_88] : memref<8x8x32xf32, #tpu.memory_space<vmem>>, vector<1x8x32xf32>
    %394 = vector.shape_cast %393 : vector<1x8x32xf32> to vector<8x32xf32>
    %395 = tpu.concatenate %394, %387 in 1 : vector<8x32xf32>, vector<8x32xf32> -> vector<8x64xf32>
    %cst_89 = arith.constant dense<0.000000e+00> : vector<8x128xf32>
    %396 = tpu.matmul %395, %11, %cst_89 {dimension_numbers = #tpu.dot_dimension_numbers<[1], [0], [0], [1], [0, 0, 1, 1], [], []>} : vector<8x64xf32>, vector<64x128xf32>, vector<8x128xf32> -> vector<8x128xf32>
    %397 = arith.addf %396, %10 : vector<8x128xf32>
    %398 = vector.extract_strided_slice %397 {offsets = [0, 0], sizes = [8, 32], strides = [1, 1]} : vector<8x128xf32> to vector<8x32xf32>
    %399 = arith.negf %398 : vector<8x32xf32>
    %400 = math.exp %399 : vector<8x32xf32>
    %cst_90 = arith.constant 1.000000e+00 : f32
    %401 = vector.broadcast %cst_90 : f32 to vector<8x32xf32>
    %402 = arith.addf %401, %400 : vector<8x32xf32>
    %403 = arith.divf %401, %402 : vector<8x32xf32>
    %404 = vector.extract_strided_slice %397 {offsets = [0, 32], sizes = [8, 32], strides = [1, 1]} : vector<8x128xf32> to vector<8x32xf32>
    %405 = arith.negf %404 : vector<8x32xf32>
    %406 = math.exp %405 : vector<8x32xf32>
    %cst_91 = arith.constant 1.000000e+00 : f32
    %407 = vector.broadcast %cst_91 : f32 to vector<8x32xf32>
    %408 = arith.addf %407, %406 : vector<8x32xf32>
    %409 = arith.divf %407, %408 : vector<8x32xf32>
    %410 = vector.extract_strided_slice %397 {offsets = [0, 64], sizes = [8, 32], strides = [1, 1]} : vector<8x128xf32> to vector<8x32xf32>
    %411 = math.tanh %410 : vector<8x32xf32>
    %412 = vector.extract_strided_slice %397 {offsets = [0, 96], sizes = [8, 32], strides = [1, 1]} : vector<8x128xf32> to vector<8x32xf32>
    %413 = arith.negf %412 : vector<8x32xf32>
    %414 = math.exp %413 : vector<8x32xf32>
    %cst_92 = arith.constant 1.000000e+00 : f32
    %415 = vector.broadcast %cst_92 : f32 to vector<8x32xf32>
    %416 = arith.addf %415, %414 : vector<8x32xf32>
    %417 = arith.divf %415, %416 : vector<8x32xf32>
    %418 = arith.mulf %409, %385 : vector<8x32xf32>
    %419 = arith.mulf %403, %411 : vector<8x32xf32>
    %420 = arith.addf %418, %419 : vector<8x32xf32>
    %421 = math.tanh %420 : vector<8x32xf32>
    %422 = arith.mulf %417, %421 : vector<8x32xf32>
    %cst_93 = arith.constant dense<0.000000e+00> : vector<8x128xf32>
    %423 = tpu.matmul %422, %12, %cst_93 {dimension_numbers = #tpu.dot_dimension_numbers<[1], [0], [0], [1], [0, 0, 1, 1], [], []>} : vector<8x32xf32>, vector<32x128xf32>, vector<8x128xf32> -> vector<8x128xf32>
    %424 = vector.broadcast %13 : vector<1x128xf32> to vector<8x128xf32>
    %425 = arith.addf %423, %424 : vector<8x128xf32>
    %426 = vector.extract_strided_slice %425 {offsets = [0, 0], sizes = [8, 32], strides = [1, 1]} : vector<8x128xf32> to vector<8x32xf32>
    %427 = arith.negf %426 : vector<8x32xf32>
    %428 = math.exp %427 : vector<8x32xf32>
    %cst_94 = arith.constant 1.000000e+00 : f32
    %429 = vector.broadcast %cst_94 : f32 to vector<8x32xf32>
    %430 = arith.addf %429, %428 : vector<8x32xf32>
    %431 = arith.divf %429, %430 : vector<8x32xf32>
    %432 = vector.extract_strided_slice %425 {offsets = [0, 32], sizes = [8, 32], strides = [1, 1]} : vector<8x128xf32> to vector<8x32xf32>
    %433 = arith.negf %432 : vector<8x32xf32>
    %434 = math.exp %433 : vector<8x32xf32>
    %cst_95 = arith.constant 1.000000e+00 : f32
    %435 = vector.broadcast %cst_95 : f32 to vector<8x32xf32>
    %436 = arith.addf %435, %434 : vector<8x32xf32>
    %437 = arith.divf %435, %436 : vector<8x32xf32>
    %438 = vector.extract_strided_slice %425 {offsets = [0, 64], sizes = [8, 32], strides = [1, 1]} : vector<8x128xf32> to vector<8x32xf32>
    %439 = math.tanh %438 : vector<8x32xf32>
    %440 = vector.extract_strided_slice %425 {offsets = [0, 96], sizes = [8, 32], strides = [1, 1]} : vector<8x128xf32> to vector<8x32xf32>
    %441 = arith.negf %440 : vector<8x32xf32>
    %442 = math.exp %441 : vector<8x32xf32>
    %cst_96 = arith.constant 1.000000e+00 : f32
    %443 = vector.broadcast %cst_96 : f32 to vector<8x32xf32>
    %444 = arith.addf %443, %442 : vector<8x32xf32>
    %445 = arith.divf %443, %444 : vector<8x32xf32>
    %446 = arith.mulf %437, %420 : vector<8x32xf32>
    %447 = arith.mulf %431, %439 : vector<8x32xf32>
    %448 = arith.addf %446, %447 : vector<8x32xf32>
    %449 = math.tanh %448 : vector<8x32xf32>
    %450 = arith.mulf %445, %449 : vector<8x32xf32>
    %c8_i32_97 = arith.constant 8 : i32
    %451 = arith.muli %c6_i32, %c8_i32_97 : i32
    %452 = tpu.assume_multiple %451, 8 : i32
    %453 = arith.index_cast %452 : i32 to index
    %c0_98 = arith.constant 0 : index
    %454 = vector.load %arg13[%453, %c0_98] : memref<64x32xf32, #tpu.memory_space<vmem>>, vector<8x32xf32>
    tpu.vector_store %arg13[%453, %c0_98], %450 {strides = array<i32>} : memref<64x32xf32, #tpu.memory_space<vmem>>, vector<8x32xf32>,
    %c7_i32 = arith.constant 7 : i32
    %455 = arith.index_cast %c7_i32 : i32 to index
    %c0_99 = arith.constant 0 : index
    %c0_100 = arith.constant 0 : index
    %456 = vector.load %arg2[%455, %c0_99, %c0_100] : memref<8x8x32xf32, #tpu.memory_space<vmem>>, vector<1x8x32xf32>
    %457 = vector.shape_cast %456 : vector<1x8x32xf32> to vector<8x32xf32>
    %458 = tpu.concatenate %457, %450 in 1 : vector<8x32xf32>, vector<8x32xf32> -> vector<8x64xf32>
    %cst_101 = arith.constant dense<0.000000e+00> : vector<8x128xf32>
    %459 = tpu.matmul %458, %11, %cst_101 {dimension_numbers = #tpu.dot_dimension_numbers<[1], [0], [0], [1], [0, 0, 1, 1], [], []>} : vector<8x64xf32>, vector<64x128xf32>, vector<8x128xf32> -> vector<8x128xf32>
    %460 = arith.addf %459, %10 : vector<8x128xf32>
    %461 = vector.extract_strided_slice %460 {offsets = [0, 0], sizes = [8, 32], strides = [1, 1]} : vector<8x128xf32> to vector<8x32xf32>
    %462 = arith.negf %461 : vector<8x32xf32>
    %463 = math.exp %462 : vector<8x32xf32>
    %cst_102 = arith.constant 1.000000e+00 : f32
    %464 = vector.broadcast %cst_102 : f32 to vector<8x32xf32>
    %465 = arith.addf %464, %463 : vector<8x32xf32>
    %466 = arith.divf %464, %465 : vector<8x32xf32>
    %467 = vector.extract_strided_slice %460 {offsets = [0, 32], sizes = [8, 32], strides = [1, 1]} : vector<8x128xf32> to vector<8x32xf32>
    %468 = arith.negf %467 : vector<8x32xf32>
    %469 = math.exp %468 : vector<8x32xf32>
    %cst_103 = arith.constant 1.000000e+00 : f32
    %470 = vector.broadcast %cst_103 : f32 to vector<8x32xf32>
    %471 = arith.addf %470, %469 : vector<8x32xf32>
    %472 = arith.divf %470, %471 : vector<8x32xf32>
    %473 = vector.extract_strided_slice %460 {offsets = [0, 64], sizes = [8, 32], strides = [1, 1]} : vector<8x128xf32> to vector<8x32xf32>
    %474 = math.tanh %473 : vector<8x32xf32>
    %475 = vector.extract_strided_slice %460 {offsets = [0, 96], sizes = [8, 32], strides = [1, 1]} : vector<8x128xf32> to vector<8x32xf32>
    %476 = arith.negf %475 : vector<8x32xf32>
    %477 = math.exp %476 : vector<8x32xf32>
    %cst_104 = arith.constant 1.000000e+00 : f32
    %478 = vector.broadcast %cst_104 : f32 to vector<8x32xf32>
    %479 = arith.addf %478, %477 : vector<8x32xf32>
    %480 = arith.divf %478, %479 : vector<8x32xf32>
    %481 = arith.mulf %472, %448 : vector<8x32xf32>
    %482 = arith.mulf %466, %474 : vector<8x32xf32>
    %483 = arith.addf %481, %482 : vector<8x32xf32>
    %484 = math.tanh %483 : vector<8x32xf32>
    %485 = arith.mulf %480, %484 : vector<8x32xf32>
    %cst_105 = arith.constant dense<0.000000e+00> : vector<8x128xf32>
    %486 = tpu.matmul %485, %12, %cst_105 {dimension_numbers = #tpu.dot_dimension_numbers<[1], [0], [0], [1], [0, 0, 1, 1], [], []>} : vector<8x32xf32>, vector<32x128xf32>, vector<8x128xf32> -> vector<8x128xf32>
    %487 = vector.broadcast %13 : vector<1x128xf32> to vector<8x128xf32>
    %488 = arith.addf %486, %487 : vector<8x128xf32>
    %489 = vector.extract_strided_slice %488 {offsets = [0, 0], sizes = [8, 32], strides = [1, 1]} : vector<8x128xf32> to vector<8x32xf32>
    %490 = arith.negf %489 : vector<8x32xf32>
    %491 = math.exp %490 : vector<8x32xf32>
    %cst_106 = arith.constant 1.000000e+00 : f32
    %492 = vector.broadcast %cst_106 : f32 to vector<8x32xf32>
    %493 = arith.addf %492, %491 : vector<8x32xf32>
    %494 = arith.divf %492, %493 : vector<8x32xf32>
    %495 = vector.extract_strided_slice %488 {offsets = [0, 32], sizes = [8, 32], strides = [1, 1]} : vector<8x128xf32> to vector<8x32xf32>
    %496 = arith.negf %495 : vector<8x32xf32>
    %497 = math.exp %496 : vector<8x32xf32>
    %cst_107 = arith.constant 1.000000e+00 : f32
    %498 = vector.broadcast %cst_107 : f32 to vector<8x32xf32>
    %499 = arith.addf %498, %497 : vector<8x32xf32>
    %500 = arith.divf %498, %499 : vector<8x32xf32>
    %501 = vector.extract_strided_slice %488 {offsets = [0, 64], sizes = [8, 32], strides = [1, 1]} : vector<8x128xf32> to vector<8x32xf32>
    %502 = math.tanh %501 : vector<8x32xf32>
    %503 = vector.extract_strided_slice %488 {offsets = [0, 96], sizes = [8, 32], strides = [1, 1]} : vector<8x128xf32> to vector<8x32xf32>
    %504 = arith.negf %503 : vector<8x32xf32>
    %505 = math.exp %504 : vector<8x32xf32>
    %cst_108 = arith.constant 1.000000e+00 : f32
    %506 = vector.broadcast %cst_108 : f32 to vector<8x32xf32>
    %507 = arith.addf %506, %505 : vector<8x32xf32>
    %508 = arith.divf %506, %507 : vector<8x32xf32>
    %509 = arith.mulf %500, %483 : vector<8x32xf32>
    %510 = arith.mulf %494, %502 : vector<8x32xf32>
    %511 = arith.addf %509, %510 : vector<8x32xf32>
    %512 = math.tanh %511 : vector<8x32xf32>
    %513 = arith.mulf %508, %512 : vector<8x32xf32>
    %c8_i32_109 = arith.constant 8 : i32
    %514 = arith.muli %c7_i32, %c8_i32_109 : i32
    %515 = tpu.assume_multiple %514, 8 : i32
    %516 = arith.index_cast %515 : i32 to index
    %c0_110 = arith.constant 0 : index
    %517 = vector.load %arg13[%516, %c0_110] : memref<64x32xf32, #tpu.memory_space<vmem>>, vector<8x32xf32>
    tpu.vector_store %arg13[%516, %c0_110], %513 {strides = array<i32>} : memref<64x32xf32, #tpu.memory_space<vmem>>, vector<8x32xf32>,
    %c8_i32_111 = arith.constant 8 : i32
    %c0_112 = arith.constant 0 : index
    %c0_113 = arith.constant 0 : index
    %518 = vector.load %arg13[%c0_112, %c0_113] : memref<64x32xf32, #tpu.memory_space<vmem>>, vector<64x32xf32>
    %c0_114 = arith.constant 0 : index
    %c0_115 = arith.constant 0 : index
    %519 = vector.load %arg10[%c0_114, %c0_115] : memref<32x64xf32, #tpu.memory_space<vmem>>, vector<32x64xf32>
    %cst_116 = arith.constant dense<0.000000e+00> : vector<64x64xf32>
    %520 = tpu.matmul %518, %519, %cst_116 {dimension_numbers = #tpu.dot_dimension_numbers<[1], [0], [0], [1], [0, 0, 1, 1], [], []>} : vector<64x32xf32>, vector<32x64xf32>, vector<64x64xf32> -> vector<64x64xf32>
    %c0_117 = arith.constant 0 : index
    %c0_118 = arith.constant 0 : index
    %521 = vector.load %arg11[%c0_117, %c0_118] : memref<1x64xf32, #tpu.memory_space<vmem>>, vector<1x64xf32>
    %522 = vector.broadcast %521 : vector<1x64xf32> to vector<64x64xf32>
    %523 = arith.addf %520, %522 : vector<64x64xf32>
    %c0_119 = arith.constant 0 : index
    %c0_120 = arith.constant 0 : index
    %524 = vector.load %arg12[%c0_119, %c0_120] : memref<64x64xf32, #tpu.memory_space<vmem>>, vector<64x64xf32>
    tpu.vector_store %arg12[%c0_119, %c0_120], %523 {strides = array<i32>} : memref<64x64xf32, #tpu.memory_space<vmem>>, vector<64x64xf32>,
    return
  }
  func.func @transform_0(%arg0: i32) -> (i32, i32) {
    %c0_i32 = arith.constant 0 : i32
    %c0_i32_0 = arith.constant 0 : i32
    %c0_i32_1 = arith.constant 0 : i32
    return %c0_i32, %c0_i32_0 : i32, i32
  }
  func.func @transform_1(%arg0: i32) -> (i32, i32, i32) {
    %c0_i32 = arith.constant 0 : i32
    %c0_i32_0 = arith.constant 0 : i32
    %c0_i32_1 = arith.constant 0 : i32
    %c0_i32_2 = arith.constant 0 : i32
    return %c0_i32, %c0_i32_0, %c0_i32_1 : i32, i32, i32
  }
  func.func @transform_2(%arg0: i32) -> (i32, i32) {
    %c0_i32 = arith.constant 0 : i32
    %c0_i32_0 = arith.constant 0 : i32
    %c0_i32_1 = arith.constant 0 : i32
    return %c0_i32, %c0_i32_0 : i32, i32
  }
  func.func @transform_3(%arg0: i32) -> (i32, i32) {
    %c0_i32 = arith.constant 0 : i32
    %c0_i32_0 = arith.constant 0 : i32
    %c0_i32_1 = arith.constant 0 : i32
    return %c0_i32, %c0_i32_0 : i32, i32
  }
  func.func @transform_4(%arg0: i32) -> (i32, i32) {
    %c0_i32 = arith.constant 0 : i32
    %c0_i32_0 = arith.constant 0 : i32
    %c0_i32_1 = arith.constant 0 : i32
    return %c0_i32, %c0_i32_0 : i32, i32
  }
  func.func @transform_5(%arg0: i32) -> (i32, i32) {
    %c0_i32 = arith.constant 0 : i32
    %c0_i32_0 = arith.constant 0 : i32
    %c0_i32_1 = arith.constant 0 : i32
    return %c0_i32, %c0_i32_0 : i32, i32
  }
  func.func @transform_6(%arg0: i32) -> (i32, i32) {
    %c0_i32 = arith.constant 0 : i32
    %c0_i32_0 = arith.constant 0 : i32
    %c0_i32_1 = arith.constant 0 : i32
    return %c0_i32, %c0_i32_0 : i32, i32
  }
  func.func @transform_7(%arg0: i32) -> (i32, i32) {
    %c0_i32 = arith.constant 0 : i32
    %c0_i32_0 = arith.constant 0 : i32
    %c0_i32_1 = arith.constant 0 : i32
    return %c0_i32, %c0_i32_0 : i32, i32
  }
  func.func @transform_8(%arg0: i32) -> (i32, i32) {
    %c0_i32 = arith.constant 0 : i32
    %c0_i32_0 = arith.constant 0 : i32
    %c0_i32_1 = arith.constant 0 : i32
    return %c0_i32, %c0_i32_0 : i32, i32
  }
  func.func @transform_9(%arg0: i32) -> (i32, i32) {
    %c0_i32 = arith.constant 0 : i32
    %c0_i32_0 = arith.constant 0 : i32
    %c0_i32_1 = arith.constant 0 : i32
    return %c0_i32, %c0_i32_0 : i32, i32
  }
  func.func @transform_10(%arg0: i32) -> (i32, i32) {
    %c0_i32 = arith.constant 0 : i32
    %c0_i32_0 = arith.constant 0 : i32
    %c0_i32_1 = arith.constant 0 : i32
    return %c0_i32, %c0_i32_0 : i32, i32
  }
  func.func @transform_11(%arg0: i32) -> (i32, i32) {
    %c0_i32 = arith.constant 0 : i32
    %c0_i32_0 = arith.constant 0 : i32
    %c0_i32_1 = arith.constant 0 : i32
    return %c0_i32, %c0_i32_0 : i32, i32
  }
}

</mosaic_0001>

<bundles_post_ra>
// kernel: caption_net_forward.1
= control target key start
LH: loop header
LB: loop body
LE: loop exit
PB: predicated region body
PF: predicated region fallthrough
CT: control target
= control target key end

     0   :  { %s1483_s13 = smov 32   ;;  %vm137_vm0 = vcmask 261120   ;;  %vm139_vm1 = vcmask 523264   ;;  %s1484_s21 = smov 64   ;;  %s2060_s2 = inlined_call_operand.vmem [shape: f32[128,32], index: 2, kind: input, shape index: {}]   ;;  %s2061_s3 = inlined_call_operand.vmem [shape: f32[1,32], index: 3, kind: input, shape index: {}]   ;;  %s2062_s0 = inlined_call_operand.vmem [shape: f32[8,128], index: 0, kind: input, shape index: {}]   ;;  %s2063_s5 = inlined_call_operand.vmem [shape: f32[128,128], index: 5, kind: input, shape index: {}]   ;;  %s2064_s4 = inlined_call_operand.vmem [shape: f32[64,128], index: 4, kind: input, shape index: {}]   ;;  %s2065_s6 = inlined_call_operand.vmem [shape: f32[1,128], index: 6, kind: input, shape index: {}]   ;;  %s2066_s1 = inlined_call_operand.vmem [shape: f32[8,8,32], index: 1, kind: input, shape index: {}]   ;;  %s2067_s8 = inlined_call_operand.vmem [shape: f32[1,128], index: 8, kind: input, shape index: {}]   ;;  %s2068_s7 = inlined_call_operand.vmem [shape: f32[32,128], index: 7, kind: input, shape index: {}]   ;;  %s2069_s9 = inlined_call_operand.vmem [shape: f32[32,64], index: 9, kind: input, shape index: {}]   ;;  %s2070_s10 = inlined_call_operand.vmem [shape: f32[1,64], index: 10, kind: input, shape index: {}]   ;;  %s2071_s11 = inlined_call_operand.vmem [shape: f32[64,64], index: 11, kind: output, shape index: {}]  }
   0x1   :  { %v54_v0 = vld [vmem:[%s2060_s2 + $0x78] sm:$0xff]  ;;  %v53_v1 = vld [vmem:[%s2060_s2 + $0x70] sm:$0xff]  ;;  %v52_v2 = vld [vmem:[%s2060_s2 + $0x68] sm:$0xff] }
   0x2   :  { %59 = vmatpush.msra.mxu0 %v54_v0  ;;  %v51_v3 = vld [vmem:[%s2060_s2 + $0x60] sm:$0xff]  ;;  %v50_v4 = vld [vmem:[%s2060_s2 + $0x58] sm:$0xff]  ;;  %v49_v5 = vld [vmem:[%s2060_s2 + $0x50] sm:$0xff] }
   0x3   :  { %v48_v6 = vld [vmem:[%s2060_s2 + $0x48] sm:$0xff]  ;;  %v47_v7 = vld [vmem:[%s2060_s2 + $0x40] sm:$0xff]  ;;  %v46_v8 = vld [vmem:[%s2060_s2 + $0x38] sm:$0xff] }
   0x4   :  { %60 = vmatpush.msra.mxu0 %v53_v1  ;;  %v45_v9 = vld [vmem:[%s2060_s2 + $0x30] sm:$0xff]  ;;  %v44_v10 = vld [vmem:[%s2060_s2 + $0x28] sm:$0xff]  ;;  %v43_v11 = vld [vmem:[%s2060_s2 + $0x20] sm:$0xff] }
   0x5   :  { %v42_v12 = vld [vmem:[%s2060_s2 + $0x18] sm:$0xff]  ;;  %v41_v13 = vld [vmem:[%s2060_s2 + $0x10] sm:$0xff]  ;;  %v40_v14 = vld [vmem:[%s2060_s2 + $0x8] sm:$0xff] }
   0x6   :  { %61 = vmatpush.msra.mxu0 %v52_v2  ;;  %v39_v15 = vld [vmem:[%s2060_s2] sm:$0xff]  ;;  %v94_v17 = vld [vmem:[%s2063_s5 + $0x78] sm:$0xff]  ;;  %v93_v18 = vld [vmem:[%s2063_s5 + $0x70] sm:$0xff] }
   0x7   :  { %v38_v16 = vld [vmem:[%s2062_s0] sm:$0xff]  ;;  %99 = vmatpush.msra.mxu1 %v94_v17  ;;  %v92_v19 = vld [vmem:[%s2063_s5 + $0x68] sm:$0xff]  ;;  %v1608_v20 = vld [vmem:[%s2064_s4 + $0x38] sm:$0xff] }
   0x8   :  { %62 = vmatpush.msra.mxu0 %v51_v3  ;;  %151 = vmatpush.msra.mxu2 %v1608_v20  ;;  %v1614_v21 = vld [vmem:[%s2064_s4 + $0x30] sm:$0xff]  ;;  %v91_v22 = vld [vmem:[%s2063_s5 + $0x60] sm:$0xff]  ;;  %v1622_v23 = vld [vmem:[%s2064_s4 + $0x28] sm:$0xff] }
   0x9   :  { %100 = vmatpush.msra.mxu1 %v93_v18  ;;  %v90_v24 = vld [vmem:[%s2063_s5 + $0x58] sm:$0xff]  ;;  %v1631_v25 = vld [vmem:[%s2064_s4 + $0x20] sm:$0xff]  ;;  %v89_v26 = vld [vmem:[%s2063_s5 + $0x50] sm:$0xff] }
   0xa   :  { %63 = vmatpush.msra.mxu0 %v50_v4  ;;  %152 = vmatpush.msra.mxu2 %v1614_v21  ;;  %v1640_v27 = vld [vmem:[%s2064_s4 + $0x18] sm:$0xff]  ;;  %v88_v28 = vld [vmem:[%s2063_s5 + $0x48] sm:$0xff]  ;;  %v1649_v29 = vld [vmem:[%s2064_s4 + $0x10] sm:$0xff] }
   0xb   :  { %101 = vmatpush.msra.mxu1 %v92_v19  ;;  %v87_v30 = vld [vmem:[%s2063_s5 + $0x40] sm:$0xff]  ;;  %v1658_v31 = vld [vmem:[%s2064_s4 + $0x8] sm:$0xff]  ;;  %v86_v32 = vld [vmem:[%s2063_s5 + $0x38] sm:$0xff] }
   0xc   :  { %64 = vmatpush.msra.mxu0 %v49_v5  ;;  %153 = vmatpush.msra.mxu2 %v1622_v23  ;;  %v85_v33 = vld [vmem:[%s2063_s5 + $0x30] sm:$0xff]  ;;  %v84_v34 = vld [vmem:[%s2063_s5 + $0x28] sm:$0xff]  ;;  %v83_v35 = vld [vmem:[%s2063_s5 + $0x20] sm:$0xff] }
   0xd   :  { %102 = vmatpush.msra.mxu1 %v91_v22  ;;  %v82_v36 = vld [vmem:[%s2063_s5 + $0x18] sm:$0xff]  ;;  %v1350_v37 = vld [vmem:[%s2061_s3] ss:$0 sm:$0xff]  ;;  %v81_v40 = vld [vmem:[%s2063_s5 + $0x10] sm:$0xff] }
   0xe   :  { %65 = vmatpush.msra.mxu0 %v48_v6  ;;  %154 = vmatpush.msra.mxu2 %v1631_v25  ;;  %v1687_v41 = vld [vmem:[%s2064_s4] sm:$0xff]  ;;  %v80_v42 = vld [vmem:[%s2063_s5 + $0x8] sm:$0xff] }
   0xf   :  { %103 = vmatpush.msra.mxu1 %v90_v24  ;;  %v79_v43 = vld [vmem:[%s2063_s5] sm:$0xff] }
  0x10   :  { %66 = vmatpush.msra.mxu0 %v47_v7  ;;  %155 = vmatpush.msra.mxu2 %v1640_v27  ;;  %v132_v44 = vld [vmem:[%s2066_s1] sm:$0xff] }
  0x11   :  { %104 = vmatpush.msra.mxu1 %v89_v26  ;;  %v1351_v47 = vld [vmem:[%s2065_s6] ss:$0 sm:$0xff] }
  0x12   :  { %67 = vmatpush.msra.mxu0 %v46_v8  ;;  %156 = vmatpush.msra.mxu2 %v1649_v29  ;;  %v1724_v8 = vld [vmem:[%s2068_s7 + $0x18] sm:$0xff] }
  0x13   :  { %105 = vmatpush.msra.mxu1 %v88_v28  ;;  %487 = vmatpush.msra.mxu3 %v1724_v8 }
  0x14   :  { %68 = vmatpush.msra.mxu0 %v45_v9  ;;  %157 = vmatpush.msra.mxu2 %v1658_v31  ;;  %v1729_v9 = vld [vmem:[%s2068_s7 + $0x10] sm:$0xff] }
  0x15   :  { %106 = vmatpush.msra.mxu1 %v87_v30  ;;  %488 = vmatpush.msra.mxu3 %v1729_v9 }
  0x16   :  { %69 = vmatpush.msra.mxu0 %v44_v10  ;;  %158 = vmatpush.msra.mxu2 %v1687_v41  ;;  %v1736_v10 = vld [vmem:[%s2068_s7 + $0x8] sm:$0xff] }
  0x17   :  { %107 = vmatpush.msra.mxu1 %v86_v32  ;;  %489 = vmatpush.msra.mxu3 %v1736_v10 }
  0x18   :  { %70 = vmatpush.msra.mxu0 %v43_v11  ;;  %353 = vmatpush.msrb.mxu2 %v1724_v8  ;;  %v1745_v11 = vld [vmem:[%s2068_s7] sm:$0xff] }
  0x19   :  { %108 = vmatpush.msra.mxu1 %v85_v33  ;;  %490 = vmatpush.msra.mxu3 %v1745_v11 }
  0x1a   :  { %71 = vmatpush.msra.mxu0 %v42_v12  ;;  %354 = vmatpush.msrb.mxu2 %v1729_v9 }
  0x1b   :  { %109 = vmatpush.msra.mxu1 %v84_v34  ;;  %1023 = vmatpush.msrb.mxu3 %v1724_v8 }
  0x1c   :  { %72 = vmatpush.msra.mxu0 %v41_v13  ;;  %355 = vmatpush.msrb.mxu2 %v1736_v10 }
  0x1d   :  { %110 = vmatpush.msra.mxu1 %v83_v35  ;;  %1024 = vmatpush.msrb.mxu3 %v1729_v9 }
  0x1e   :  { %73 = vmatpush.msra.mxu0 %v40_v14  ;;  %356 = vmatpush.msrb.mxu2 %v1745_v11 }
  0x1f   :  { %111 = vmatpush.msra.mxu1 %v82_v36  ;;  %1025 = vmatpush.msrb.mxu3 %v1736_v10 }
  0x20   :  { %74 = vmatpush.msra.mxu0 %v39_v15  ;;  %v1786_v15 = vld [vmem:[%s2067_s8] ss:$0 sm:$0xff] }
  0x21   :  { %75 = vmatmul.f32.vlgmr.msra.gmra.mxu0 %v38_v16  ;;  %112 = vmatpush.msra.mxu1 %v81_v40 }
  0x22   :  { %220 = vmatpush.msrb.mxu0 %v1724_v8  ;;  %1026 = vmatpush.msrb.mxu3 %v1745_v11 }
  0x23   :  { %113 = vmatpush.msra.mxu1 %v80_v42 }
  0x24   :  { %221 = vmatpush.msrb.mxu0 %v1729_v9 }
  0x25   :  { %114 = vmatpush.msra.mxu1 %v79_v43 }
  0x26   :  { %115 = vmatmul.f32.vlgmr.msra.gmra.mxu1 %v38_v16  ;;  %222 = vmatpush.msrb.mxu0 %v1736_v10 }
  0x27   :  { %287 = vmatpush.msrb.mxu1 %v1608_v20 }
  0x28   :  { %223 = vmatpush.msrb.mxu0 %v1745_v11 }
  0x29   :  { %288 = vmatpush.msrb.mxu1 %v1614_v21 }
  0x2a   :  { %555 = vmatpush.msra.mxu0 %v1608_v20 }
  0x2b   :  { %289 = vmatpush.msrb.mxu1 %v1622_v23 }
  0x2c   :  { %556 = vmatpush.msra.mxu0 %v1614_v21 }
  0x2d   :  { %290 = vmatpush.msrb.mxu1 %v1631_v25 }
  0x2e   :  { %557 = vmatpush.msra.mxu0 %v1622_v23 }
  0x2f   :  { %291 = vmatpush.msrb.mxu1 %v1640_v27 }
  0x30   :  { %558 = vmatpush.msra.mxu0 %v1631_v25 }
  0x31   :  { %292 = vmatpush.msrb.mxu1 %v1649_v29 }
  0x32   :  { %559 = vmatpush.msra.mxu0 %v1640_v27 }
  0x33   :  { %293 = vmatpush.msrb.mxu1 %v1658_v31 }
  0x34   :  { %560 = vmatpush.msra.mxu0 %v1649_v29 }
  0x35   :  { %294 = vmatpush.msrb.mxu1 %v1687_v41 }
  0x36   :  { %561 = vmatpush.msra.mxu0 %v1658_v31 }
  0x37   :  { %621 = vmatpush.msra.mxu1 %v1724_v8 }
  0x38   :  { %562 = vmatpush.msra.mxu0 %v1687_v41 }
  0x39   :  { %622 = vmatpush.msra.mxu1 %v1729_v9 }
  0x3b   :  { %623 = vmatpush.msra.mxu1 %v1736_v10 }
  0x3d   :  { %624 = vmatpush.msra.mxu1 %v1745_v11 }
  0x9e   :  { %v76_v38 = vpop.f32.mrf.mxu0 }
  0x9f   :  { %v77_v39 = vadd.f32 %v1350_v37, %v76_v38 }
  0xa1   :  { %134 = vrot.lane.b32.xlu0 %v77_v39, %s1483_s13 }
  0xa3   :  { %v116_v48 = vpop.f32.mrf.mxu1 }
  0xa4   :  { %v1712_v49 = vadd.f32 %v1351_v47, %v116_v48  ;;  %v1305_v48 = vld [vmem:[%s2066_s1 + $0x8] sm:$0xff] }
 0x113   :  { %v135_v45 = vpop.permute.xlu0 %134 }
 0x114   :  { %v138_v46 = vsel %vm137_vm0, %v132_v44, %v135_v45 }
 0x115   :  { %1301 = vmatmul.msk.f32.vlgmr.msra.gmra.mxu2 %vm139_vm1, %v138_v46 }
 0x116   :  { %421 = vmatpush.msra.mxu2 %v1608_v20 }
 0x118   :  { %422 = vmatpush.msra.mxu2 %v1614_v21 }
 0x11a   :  { %423 = vmatpush.msra.mxu2 %v1622_v23 }
 0x11c   :  { %424 = vmatpush.msra.mxu2 %v1631_v25 }
 0x11e   :  { %425 = vmatpush.msra.mxu2 %v1640_v27 }
 0x120   :  { %426 = vmatpush.msra.mxu2 %v1649_v29 }
 0x122   :  { %427 = vmatpush.msra.mxu2 %v1658_v31 }
 0x124   :  { %428 = vmatpush.msra.mxu2 %v1687_v41 }
 0x198   :  { %v160_v50 = vpop.f32.mrf.mxu2 }
 0x199   :  { %v161_v51 = vadd.f32 %v160_v50, %v1712_v49 }
 0x19b   :  { %1354 = vtanh.f32 %v161_v51  ;;  %v1302_v53 = vmul.f32 -1.442695, %v161_v51 }
 0x19d   :  { %1356 = vpow2.f32 %v1302_v53 }
 0x1a1   :  { %v1355_v52 = vpop.eup %1354 }
 0x1a2   :  { %185 = vrot.lane.b32.xlu0 %v1355_v52, %s1484_s21 }
 0x1a3   :  { %v1357_v54 = vpop.eup %1356 }
 0x1a4   :  { %v166_v55 = vadd.f32 1.0, %v1357_v54 }
 0x1a6   :  { %1358 = vrcp.f32 %v166_v55  ;;  %v178_v61 = vand.u32 2147483648, %v166_v55  ;;  %vm172_vm3 = vweird.f32 %v166_v55  ;;  %v176_v62 = vand.u32 2147483647, %v166_v55 }
 0x1a8   :  { %v179_v0 = vor.u32 1.1754944e-38, %v178_v61  ;;  %vm177_vm5 = vcmp.eq.f32.partialorder %v176_v62, 8.507059e+37 }
 0x1ac   :  { %v1359_v56 = vpop.eup %1358 }
 0x1ad   :  { %v168_v57 = vmul.f32 %v1359_v56, %v166_v55  ;;  %vm173_vm2 = vweird.f32 %v1359_v56 }
 0x1ae   :  { %vm174_vm4 = vmor %vm172_vm3, %vm173_vm2 }
 0x1af   :  { %v169_v58 = vsub.f32 1.0, %v168_v57 }
 0x1b1   :  { %v170_v59 = vmul.f32 %v1359_v56, %v169_v58 }
 0x1b3   :  { %v171_v60 = vadd.f32 %v1359_v56, %v170_v59 }
 0x1b5   :  { %v175_v63 = vsel %vm174_vm4, %v1359_v56, %v171_v60 }
 0x1b6   :  { %v180_v2 = vsel %vm177_vm5, %v179_v0, %v175_v63 }
 0x1b7   :  { %v183_v4 = vmul.f32 %v180_v2, %v135_v45 }
 0x214   :  { %v186_v1 = vpop.permute.xlu0 %185 }
 0x215   :  { %v188_v3 = vmul.f32 %v186_v1, %v180_v2 }
 0x217   :  { %190 = vrot.lane.b32.xlu1 %v188_v3, %s1483_s13 }
 0x289   :  { %v191_v5 = vpop.permute.xlu1 %190 }
 0x28a   :  { %v1717_v6 = vadd.f32 %v191_v5, %v183_v4 }
 0x28c   :  { %1360 = vtanh.f32 %v1717_v6 }
 0x292   :  { %v1361_v7 = vpop.eup %1360 }
 0x293   :  { %196 = vrot.lane.b32.xlu1 %v1361_v7, %s1484_s21 }
 0x305   :  { %v197_v12 = vpop.permute.xlu1 %196 }
 0x306   :  { %v199_v13 = vmul.f32 %v197_v12, %v180_v2 }
 0x308   :  { %204 = vrot.lane.b32.xlu2 %v199_v13, %s1483_s13 }
 0x362   :  { %v205_v14 = vpop.permute.xlu2 %204 }
 0x363   :  { %1303 = vmatmul.msk.f32.vlgmr.msrb.gmra.mxu0 %vm137_vm0, %v205_v14 }
 0x364   :  { %889 = vmatpush.msrb.mxu0 %v1724_v8 }
 0x366   :  { %890 = vmatpush.msrb.mxu0 %v1729_v9 }
 0x368   :  { %891 = vmatpush.msrb.mxu0 %v1736_v10 }
 0x36a   :  { %892 = vmatpush.msrb.mxu0 %v1745_v11 }
 0x3e0   :  { %v225_v16 = vpop.f32.mrf.mxu0 }
 0x3e1   :  { %v226_v17 = vadd.f32 %v1786_v15, %v225_v16 }
 0x3e3   :  { %1362 = vtanh.f32 %v226_v17  ;;  %v1304_v19 = vmul.f32 -1.442695, %v226_v17 }
 0x3e5   :  { %1364 = vpow2.f32 %v1304_v19 }
 0x3e9   :  { %v1363_v18 = vpop.eup %1362 }
 0x3ea   :  { %250 = vrot.lane.b32.xlu2 %v1363_v18, %s1484_s21 }
 0x3eb   :  { %v1365_v22 = vpop.eup %1364 }
 0x3ec   :  { %v231_v24 = vadd.f32 1.0, %v1365_v22 }
 0x3ee   :  { %1366 = vrcp.f32 %v231_v24  ;;  %v243_v34 = vand.u32 2147483648, %v231_v24  ;;  %vm237_vm7 = vweird.f32 %v231_v24  ;;  %v241_v35 = vand.u32 2147483647, %v231_v24 }
 0x3f0   :  { %v244_v37 = vor.u32 1.1754944e-38, %v243_v34  ;;  %vm242_vm9 = vcmp.eq.f32.partialorder %v241_v35, 8.507059e+37 }
 0x3f4   :  { %v1367_v26 = vpop.eup %1366 }
 0x3f5   :  { %v233_v28 = vmul.f32 %v1367_v26, %v231_v24  ;;  %vm238_vm6 = vweird.f32 %v1367_v26 }
 0x3f6   :  { %vm239_vm8 = vmor %vm237_vm7, %vm238_vm6 }
 0x3f7   :  { %v234_v30 = vsub.f32 1.0, %v233_v28 }
 0x3f9   :  { %v235_v32 = vmul.f32 %v1367_v26, %v234_v30 }
 0x3fb   :  { %v236_v33 = vadd.f32 %v1367_v26, %v235_v32 }
 0x3fd   :  { %v240_v36 = vsel %vm239_vm8, %v1367_v26, %v236_v33 }
 0x3fe   :  { %v245_v39 = vsel %vm242_vm9, %v244_v37, %v240_v36 }
 0x3ff   :  { %v248_v42 = vmul.f32 %v245_v39, %v1717_v6 }
 0x444   :  { %v251_v38 = vpop.permute.xlu2 %250 }
 0x445   :  { %v253_v40 = vmul.f32 %v251_v38, %v245_v39 }
 0x447   :  { %255 = vrot.lane.b32.xlu0 %v253_v40, %s1483_s13 }
 0x4b9   :  { %v256_v43 = vpop.permute.xlu0 %255 }
 0x4ba   :  { %v258_v44 = vadd.f32 %v256_v43, %v248_v42 }
 0x4bc   :  { %1368 = vtanh.f32 %v258_v44 }
 0x4c2   :  { %v1369_v45 = vpop.eup %1368 }
 0x4c3   :  { %261 = vrot.lane.b32.xlu1 %v1369_v45, %s1484_s21 }
 0x535   :  { %v262_v46 = vpop.permute.xlu1 %261 }
 0x536   :  { %v1793_v47 = vmul.f32 %v262_v46, %v245_v39 }
 0x538   :  { %272 = vrot.lane.b32.xlu2 %v1793_v47, %s1484_s21 }
 0x592   :  { %v273_v50 = vpop.permute.xlu2 %272 }
 0x593   :  { %v275_v51 = vsel %vm137_vm0, %v1305_v48, %v273_v50 }
 0x594   :  { %1306 = vmatmul.msk.f32.vlgmr.msrb.gmra.mxu1 %vm139_vm1, %v275_v51 }
 0x595   :  { %755 = vmatpush.msrb.mxu1 %v1724_v8 }
 0x597   :  { %756 = vmatpush.msrb.mxu1 %v1729_v9 }
 0x599   :  { %757 = vmatpush.msrb.mxu1 %v1736_v10 }
 0x59b   :  { %758 = vmatpush.msrb.mxu1 %v1745_v11 }
 0x611   :  { %v296_v52 = vpop.f32.mrf.mxu1 }
 0x612   :  { %v297_v53 = vadd.f32 %v296_v52, %v1712_v49  ;;  %v1310_v52 = vld [vmem:[%s2066_s1 + $0x10] sm:$0xff] }
 0x614   :  { %1370 = vtanh.f32 %v297_v53  ;;  %v1307_v55 = vmul.f32 -1.442695, %v297_v53 }
 0x616   :  { %1372 = vpow2.f32 %v1307_v55 }
 0x61a   :  { %v1371_v54 = vpop.eup %1370 }
 0x61b   :  { %321 = vrot.lane.b32.xlu0 %v1371_v54, %s1484_s21 }
 0x61c   :  { %v1373_v56 = vpop.eup %1372 }
 0x61d   :  { %v302_v57 = vadd.f32 1.0, %v1373_v56 }
 0x61f   :  { %1374 = vrcp.f32 %v302_v57  ;;  %v314_v63 = vand.u32 2147483648, %v302_v57  ;;  %vm308_vm11 = vweird.f32 %v302_v57  ;;  %v312_v0 = vand.u32 2147483647, %v302_v57 }
 0x621   :  { %v315_v2 = vor.u32 1.1754944e-38, %v314_v63  ;;  %vm313_vm13 = vcmp.eq.f32.partialorder %v312_v0, 8.507059e+37 }
 0x625   :  { %v1375_v58 = vpop.eup %1374 }
 0x626   :  { %v304_v59 = vmul.f32 %v1375_v58, %v302_v57  ;;  %vm309_vm10 = vweird.f32 %v1375_v58 }
 0x627   :  { %vm310_vm12 = vmor %vm308_vm11, %vm309_vm10 }
 0x628   :  { %v305_v60 = vsub.f32 1.0, %v304_v59 }
 0x62a   :  { %v306_v61 = vmul.f32 %v1375_v58, %v305_v60 }
 0x62c   :  { %v307_v62 = vadd.f32 %v1375_v58, %v306_v61 }
 0x62e   :  { %v311_v1 = vsel %vm310_vm12, %v1375_v58, %v307_v62 }
 0x62f   :  { %v316_v4 = vsel %vm313_vm13, %v315_v2, %v311_v1 }
 0x630   :  { %v319_v6 = vmul.f32 %v316_v4, %v258_v44 }
 0x68d   :  { %v322_v3 = vpop.permute.xlu0 %321 }
 0x68e   :  { %v324_v5 = vmul.f32 %v322_v3, %v316_v4 }
 0x690   :  { %326 = vrot.lane.b32.xlu1 %v324_v5, %s1483_s13 }
 0x702   :  { %v327_v7 = vpop.permute.xlu1 %326 }
 0x703   :  { %v329_v12 = vadd.f32 %v327_v7, %v319_v6 }
 0x705   :  { %1376 = vtanh.f32 %v329_v12 }
 0x70b   :  { %v1377_v13 = vpop.eup %1376 }
 0x70c   :  { %332 = vrot.lane.b32.xlu2 %v1377_v13, %s1484_s21 }
 0x766   :  { %v333_v14 = vpop.permute.xlu2 %332 }
 0x767   :  { %v335_v16 = vmul.f32 %v333_v14, %v316_v4 }
 0x769   :  { %337 = vrot.lane.b32.xlu0 %v335_v16, %s1483_s13 }
 0x7db   :  { %v338_v17 = vpop.permute.xlu0 %337 }
 0x7dc   :  { %1308 = vmatmul.msk.f32.vlgmr.msrb.gmra.mxu2 %vm137_vm0, %v338_v17 }
 0x7dd   :  { %689 = vmatpush.msrb.mxu2 %v1608_v20 }
 0x7df   :  { %690 = vmatpush.msrb.mxu2 %v1614_v21 }
 0x7e1   :  { %691 = vmatpush.msrb.mxu2 %v1622_v23 }
 0x7e3   :  { %692 = vmatpush.msrb.mxu2 %v1631_v25 }
 0x7e5   :  { %693 = vmatpush.msrb.mxu2 %v1640_v27 }
 0x7e7   :  { %694 = vmatpush.msrb.mxu2 %v1649_v29 }
 0x7e9   :  { %695 = vmatpush.msrb.mxu2 %v1658_v31 }
 0x7eb   :  { %696 = vmatpush.msrb.mxu2 %v1687_v41 }
 0x85f   :  { %v358_v18 = vpop.f32.mrf.mxu2 }
 0x860   :  { %v359_v19 = vadd.f32 %v1786_v15, %v358_v18 }
 0x862   :  { %1378 = vtanh.f32 %v359_v19  ;;  %v1309_v24 = vmul.f32 -1.442695, %v359_v19 }
 0x864   :  { %1380 = vpow2.f32 %v1309_v24 }
 0x868   :  { %v1379_v22 = vpop.eup %1378 }
 0x869   :  { %383 = vrot.lane.b32.xlu1 %v1379_v22, %s1484_s21 }
 0x86a   :  { %v1381_v26 = vpop.eup %1380 }
 0x86b   :  { %v364_v28 = vadd.f32 1.0, %v1381_v26 }
 0x86d   :  { %1382 = vrcp.f32 %v364_v28  ;;  %v376_v36 = vand.u32 2147483648, %v364_v28  ;;  %vm370_vm15 = vweird.f32 %v364_v28  ;;  %v374_v37 = vand.u32 2147483647, %v364_v28 }
 0x86f   :  { %v377_v39 = vor.u32 1.1754944e-38, %v376_v36  ;;  %vm375_vm3 = vcmp.eq.f32.partialorder %v374_v37, 8.507059e+37 }
 0x873   :  { %v1383_v30 = vpop.eup %1382 }
 0x874   :  { %v366_v32 = vmul.f32 %v1383_v30, %v364_v28  ;;  %vm371_vm14 = vweird.f32 %v1383_v30 }
 0x875   :  { %vm372_vm2 = vmor %vm370_vm15, %vm371_vm14 }
 0x876   :  { %v367_v33 = vsub.f32 1.0, %v366_v32 }
 0x878   :  { %v368_v34 = vmul.f32 %v1383_v30, %v367_v33 }
 0x87a   :  { %v369_v35 = vadd.f32 %v1383_v30, %v368_v34 }
 0x87c   :  { %v373_v38 = vsel %vm372_vm2, %v1383_v30, %v369_v35 }
 0x87d   :  { %v378_v42 = vsel %vm375_vm3, %v377_v39, %v373_v38 }
 0x87e   :  { %v381_v44 = vmul.f32 %v378_v42, %v329_v12 }
 0x8db   :  { %v384_v40 = vpop.permute.xlu1 %383 }
 0x8dc   :  { %v386_v43 = vmul.f32 %v384_v40, %v378_v42 }
 0x8de   :  { %388 = vrot.lane.b32.xlu2 %v386_v43, %s1483_s13 }
 0x938   :  { %v389_v45 = vpop.permute.xlu2 %388 }
 0x939   :  { %v391_v46 = vadd.f32 %v389_v45, %v381_v44 }
 0x93b   :  { %1384 = vtanh.f32 %v391_v46 }
 0x941   :  { %v1385_v48 = vpop.eup %1384 }
 0x942   :  { %394 = vrot.lane.b32.xlu0 %v1385_v48, %s1484_s21 }
 0x9b4   :  { %v395_v50 = vpop.permute.xlu0 %394 }
 0x9b5   :  { %v1824_v51 = vmul.f32 %v395_v50, %v378_v42 }
 0x9b7   :  { %406 = vrot.lane.b32.xlu1 %v1824_v51, %s1484_s21 }
 0xa29   :  { %v407_v53 = vpop.permute.xlu1 %406 }
 0xa2a   :  { %v409_v54 = vsel %vm137_vm0, %v1310_v52, %v407_v53 }
 0xa2b   :  { %1311 = vmatmul.msk.f32.vlgmr.msra.gmra.mxu2 %vm139_vm1, %v409_v54 }
 0xa2c   :  { %823 = vmatpush.msra.mxu2 %v1608_v20 }
 0xa2e   :  { %824 = vmatpush.msra.mxu2 %v1614_v21 }
 0xa30   :  { %825 = vmatpush.msra.mxu2 %v1622_v23 }
 0xa32   :  { %826 = vmatpush.msra.mxu2 %v1631_v25 }
 0xa34   :  { %827 = vmatpush.msra.mxu2 %v1640_v27 }
 0xa36   :  { %828 = vmatpush.msra.mxu2 %v1649_v29 }
 0xa38   :  { %829 = vmatpush.msra.mxu2 %v1658_v31 }
 0xa3a   :  { %830 = vmatpush.msra.mxu2 %v1687_v41 }
 0xaae   :  { %v430_v55 = vpop.f32.mrf.mxu2 }
 0xaaf   :  { %v431_v56 = vadd.f32 %v430_v55, %v1712_v49 }
 0xab1   :  { %1386 = vtanh.f32 %v431_v56  ;;  %v1312_v58 = vmul.f32 -1.442695, %v431_v56  ;;  %v1315_v56 = vld [vmem:[%s2066_s1 + $0x18] sm:$0xff] }
 0xab3   :  { %1388 = vpow2.f32 %v1312_v58 }
 0xab7   :  { %v1387_v57 = vpop.eup %1386 }
 0xab8   :  { %455 = vrot.lane.b32.xlu2 %v1387_v57, %s1484_s21 }
 0xab9   :  { %v1389_v59 = vpop.eup %1388 }
 0xaba   :  { %v436_v60 = vadd.f32 1.0, %v1389_v59 }
 0xabc   :  { %1390 = vrcp.f32 %v436_v60  ;;  %v448_v2 = vand.u32 2147483648, %v436_v60  ;;  %vm442_vm5 = vweird.f32 %v436_v60  ;;  %v446_v3 = vand.u32 2147483647, %v436_v60 }
 0xabe   :  { %v449_v5 = vor.u32 1.1754944e-38, %v448_v2  ;;  %vm447_vm7 = vcmp.eq.f32.partialorder %v446_v3, 8.507059e+37 }
 0xac2   :  { %v1391_v61 = vpop.eup %1390 }
 0xac3   :  { %v438_v62 = vmul.f32 %v1391_v61, %v436_v60  ;;  %vm443_vm4 = vweird.f32 %v1391_v61 }
 0xac4   :  { %vm444_vm6 = vmor %vm442_vm5, %vm443_vm4 }
 0xac5   :  { %v439_v63 = vsub.f32 1.0, %v438_v62 }
 0xac7   :  { %v440_v0 = vmul.f32 %v1391_v61, %v439_v63 }
 0xac9   :  { %v441_v1 = vadd.f32 %v1391_v61, %v440_v0 }
 0xacb   :  { %v445_v4 = vsel %vm444_vm6, %v1391_v61, %v441_v1 }
 0xacc   :  { %v450_v7 = vsel %vm447_vm7, %v449_v5, %v445_v4 }
 0xacd   :  { %v453_v13 = vmul.f32 %v450_v7, %v391_v46 }
 0xb12   :  { %v456_v6 = vpop.permute.xlu2 %455 }
 0xb13   :  { %v458_v12 = vmul.f32 %v456_v6, %v450_v7 }
 0xb15   :  { %460 = vrot.lane.b32.xlu0 %v458_v12, %s1483_s13 }
 0xb87   :  { %v461_v14 = vpop.permute.xlu0 %460 }
 0xb88   :  { %v463_v16 = vadd.f32 %v461_v14, %v453_v13 }
 0xb8a   :  { %1392 = vtanh.f32 %v463_v16 }
 0xb90   :  { %v1393_v17 = vpop.eup %1392 }
 0xb91   :  { %466 = vrot.lane.b32.xlu1 %v1393_v17, %s1484_s21 }
 0xc03   :  { %v467_v18 = vpop.permute.xlu1 %466 }
 0xc04   :  { %v469_v19 = vmul.f32 %v467_v18, %v450_v7 }
 0xc06   :  { %471 = vrot.lane.b32.xlu2 %v469_v19, %s1483_s13 }
 0xc60   :  { %v472_v22 = vpop.permute.xlu2 %471 }
 0xc61   :  { %1313 = vmatmul.msk.f32.vlgmr.msra.gmra.mxu3 %vm137_vm0, %v472_v22 }
 0xce4   :  { %v492_v24 = vpop.f32.mrf.mxu3 }
 0xce5   :  { %v493_v26 = vadd.f32 %v1786_v15, %v492_v24 }
 0xce7   :  { %1394 = vtanh.f32 %v493_v26  ;;  %v1314_v30 = vmul.f32 -1.442695, %v493_v26 }
 0xce9   :  { %1396 = vpow2.f32 %v1314_v30 }
 0xced   :  { %v1395_v28 = vpop.eup %1394 }
 0xcee   :  { %517 = vrot.lane.b32.xlu0 %v1395_v28, %s1484_s21 }
 0xcef   :  { %v1397_v32 = vpop.eup %1396 }
 0xcf0   :  { %v498_v33 = vadd.f32 1.0, %v1397_v32 }
 0xcf2   :  { %1398 = vrcp.f32 %v498_v33  ;;  %v510_v39 = vand.u32 2147483648, %v498_v33  ;;  %vm504_vm9 = vweird.f32 %v498_v33  ;;  %v508_v40 = vand.u32 2147483647, %v498_v33 }
 0xcf4   :  { %v511_v43 = vor.u32 1.1754944e-38, %v510_v39  ;;  %vm509_vm11 = vcmp.eq.f32.partialorder %v508_v40, 8.507059e+37 }
 0xcf8   :  { %v1399_v34 = vpop.eup %1398 }
 0xcf9   :  { %v500_v35 = vmul.f32 %v1399_v34, %v498_v33  ;;  %vm505_vm8 = vweird.f32 %v1399_v34 }
 0xcfa   :  { %vm506_vm10 = vmor %vm504_vm9, %vm505_vm8 }
 0xcfb   :  { %v501_v36 = vsub.f32 1.0, %v500_v35 }
 0xcfd   :  { %v502_v37 = vmul.f32 %v1399_v34, %v501_v36 }
 0xcff   :  { %v503_v38 = vadd.f32 %v1399_v34, %v502_v37 }
 0xd01   :  { %v507_v42 = vsel %vm506_vm10, %v1399_v34, %v503_v38 }
 0xd02   :  { %v512_v45 = vsel %vm509_vm11, %v511_v43, %v507_v42 }
 0xd03   :  { %v515_v48 = vmul.f32 %v512_v45, %v463_v16 }
 0xd60   :  { %v518_v44 = vpop.permute.xlu0 %517 }
 0xd61   :  { %v520_v46 = vmul.f32 %v518_v44, %v512_v45 }
 0xd63   :  { %522 = vrot.lane.b32.xlu1 %v520_v46, %s1483_s13 }
 0xdd5   :  { %v523_v50 = vpop.permute.xlu1 %522 }
 0xdd6   :  { %v525_v52 = vadd.f32 %v523_v50, %v515_v48 }
 0xdd8   :  { %1400 = vtanh.f32 %v525_v52 }
 0xdde   :  { %v1401_v53 = vpop.eup %1400 }
 0xddf   :  { %528 = vrot.lane.b32.xlu2 %v1401_v53, %s1484_s21 }
 0xe39   :  { %v529_v54 = vpop.permute.xlu2 %528 }
 0xe3a   :  { %v1851_v55 = vmul.f32 %v529_v54, %v512_v45 }
 0xe3c   :  { %540 = vrot.lane.b32.xlu0 %v1851_v55, %s1484_s21 }
 0xeae   :  { %v541_v57 = vpop.permute.xlu0 %540 }
 0xeaf   :  { %v543_v58 = vsel %vm137_vm0, %v1315_v56, %v541_v57 }
 0xeb0   :  { %1316 = vmatmul.msk.f32.vlgmr.msra.gmra.mxu0 %vm139_vm1, %v543_v58 }
 0xeb1   :  { %1091 = vmatpush.msra.mxu0 %v1608_v20 }
 0xeb3   :  { %1092 = vmatpush.msra.mxu0 %v1614_v21 }
 0xeb5   :  { %1093 = vmatpush.msra.mxu0 %v1622_v23 }
 0xeb7   :  { %1094 = vmatpush.msra.mxu0 %v1631_v25 }
 0xeb9   :  { %1095 = vmatpush.msra.mxu0 %v1640_v27 }
 0xebb   :  { %1096 = vmatpush.msra.mxu0 %v1649_v29 }
 0xebd   :  { %1097 = vmatpush.msra.mxu0 %v1658_v31 }
 0xebf   :  { %1098 = vmatpush.msra.mxu0 %v1687_v41 }
 0xf2d   :  { %v564_v59 = vpop.f32.mrf.mxu0 }
 0xf2e   :  { %v565_v60 = vadd.f32 %v564_v59, %v1712_v49 }
 0xf30   :  { %1402 = vtanh.f32 %v565_v60  ;;  %v1317_v62 = vmul.f32 -1.442695, %v565_v60 }
 0xf32   :  { %1404 = vpow2.f32 %v1317_v62 }
 0xf36   :  { %v1403_v61 = vpop.eup %1402 }
 0xf37   :  { %589 = vrot.lane.b32.xlu1 %v1403_v61, %s1484_s21 }
 0xf38   :  { %v1405_v63 = vpop.eup %1404 }
 0xf39   :  { %v570_v0 = vadd.f32 1.0, %v1405_v63 }
 0xf3b   :  { %1406 = vrcp.f32 %v570_v0  ;;  %v582_v6 = vand.u32 2147483648, %v570_v0  ;;  %vm576_vm13 = vweird.f32 %v570_v0  ;;  %v580_v7 = vand.u32 2147483647, %v570_v0 }
 0xf3d   :  { %v583_v13 = vor.u32 1.1754944e-38, %v582_v6  ;;  %vm581_vm15 = vcmp.eq.f32.partialorder %v580_v7, 8.507059e+37 }
 0xf41   :  { %v1407_v1 = vpop.eup %1406 }
 0xf42   :  { %v572_v2 = vmul.f32 %v1407_v1, %v570_v0  ;;  %vm577_vm12 = vweird.f32 %v1407_v1 }
 0xf43   :  { %vm578_vm14 = vmor %vm576_vm13, %vm577_vm12 }
 0xf44   :  { %v573_v3 = vsub.f32 1.0, %v572_v2 }
 0xf46   :  { %v574_v4 = vmul.f32 %v1407_v1, %v573_v3 }
 0xf48   :  { %v575_v5 = vadd.f32 %v1407_v1, %v574_v4 }
 0xf4a   :  { %v579_v12 = vsel %vm578_vm14, %v1407_v1, %v575_v5 }
 0xf4b   :  { %v584_v16 = vsel %vm581_vm15, %v583_v13, %v579_v12 }
 0xf4c   :  { %v587_v18 = vmul.f32 %v584_v16, %v525_v52  ;;  %v1320_v52 = vld [vmem:[%s2066_s1 + $0x20] sm:$0xff] }
 0xfa9   :  { %v590_v14 = vpop.permute.xlu1 %589 }
 0xfaa   :  { %v592_v17 = vmul.f32 %v590_v14, %v584_v16 }
 0xfac   :  { %594 = vrot.lane.b32.xlu2 %v592_v17, %s1483_s13 }
0x1006   :  { %v595_v19 = vpop.permute.xlu2 %594 }
0x1007   :  { %v597_v22 = vadd.f32 %v595_v19, %v587_v18 }
0x1009   :  { %1408 = vtanh.f32 %v597_v22 }
0x100f   :  { %v1409_v24 = vpop.eup %1408 }
0x1010   :  { %600 = vrot.lane.b32.xlu0 %v1409_v24, %s1484_s21 }
0x1082   :  { %v601_v26 = vpop.permute.xlu0 %600 }
0x1083   :  { %v603_v28 = vmul.f32 %v601_v26, %v584_v16 }
0x1085   :  { %605 = vrot.lane.b32.xlu1 %v603_v28, %s1483_s13 }
0x10f7   :  { %v606_v30 = vpop.permute.xlu1 %605 }
0x10f8   :  { %1318 = vmatmul.msk.f32.vlgmr.msra.gmra.mxu1 %vm137_vm0, %v606_v30 }
0x10f9   :  { %957 = vmatpush.msra.mxu1 %v1608_v20 }
0x10fb   :  { %958 = vmatpush.msra.mxu1 %v1614_v21 }
0x10fd   :  { %959 = vmatpush.msra.mxu1 %v1622_v23 }
0x10ff   :  { %960 = vmatpush.msra.mxu1 %v1631_v25 }
0x1101   :  { %961 = vmatpush.msra.mxu1 %v1640_v27 }
0x1103   :  { %962 = vmatpush.msra.mxu1 %v1649_v29 }
0x1105   :  { %963 = vmatpush.msra.mxu1 %v1658_v31 }
0x1107   :  { %964 = vmatpush.msra.mxu1 %v1687_v41 }
0x1175   :  { %v626_v32 = vpop.f32.mrf.mxu1 }
0x1176   :  { %v627_v33 = vadd.f32 %v1786_v15, %v626_v32 }
0x1178   :  { %1410 = vtanh.f32 %v627_v33  ;;  %v1319_v20 = vmul.f32 -1.442695, %v627_v33 }
0x117a   :  { %1412 = vpow2.f32 %v1319_v20 }
0x117e   :  { %v1411_v34 = vpop.eup %1410 }
0x117f   :  { %651 = vrot.lane.b32.xlu2 %v1411_v34, %s1484_s21 }
0x1180   :  { %v1413_v21 = vpop.eup %1412 }
0x1181   :  { %v632_v23 = vadd.f32 1.0, %v1413_v21 }
0x1183   :  { %1414 = vrcp.f32 %v632_v23  ;;  %v644_v31 = vand.u32 2147483648, %v632_v23  ;;  %vm638_vm3 = vweird.f32 %v632_v23  ;;  %v642_v41 = vand.u32 2147483647, %v632_v23 }
0x1185   :  { %v645_v38 = vor.u32 1.1754944e-38, %v644_v31  ;;  %vm643_vm5 = vcmp.eq.f32.partialorder %v642_v41, 8.507059e+37 }
0x1189   :  { %v1415_v25 = vpop.eup %1414 }
0x118a   :  { %v634_v27 = vmul.f32 %v1415_v25, %v632_v23  ;;  %vm639_vm2 = vweird.f32 %v1415_v25 }
0x118b   :  { %vm640_vm4 = vmor %vm638_vm3, %vm639_vm2 }
0x118c   :  { %v635_v35 = vsub.f32 1.0, %v634_v27 }
0x118e   :  { %v636_v29 = vmul.f32 %v1415_v25, %v635_v35 }
0x1190   :  { %v637_v36 = vadd.f32 %v1415_v25, %v636_v29 }
0x1192   :  { %v641_v37 = vsel %vm640_vm4, %v1415_v25, %v637_v36 }
0x1193   :  { %v646_v40 = vsel %vm643_vm5, %v645_v38, %v641_v37 }
0x1194   :  { %v649_v43 = vmul.f32 %v646_v40, %v597_v22 }
0x11d9   :  { %v652_v39 = vpop.permute.xlu2 %651 }
0x11da   :  { %v654_v42 = vmul.f32 %v652_v39, %v646_v40 }
0x11dc   :  { %656 = vrot.lane.b32.xlu0 %v654_v42, %s1483_s13  ;;  %v1325_v42 = vld [vmem:[%s2066_s1 + $0x28] sm:$0xff] }
0x124e   :  { %v657_v44 = vpop.permute.xlu0 %656 }
0x124f   :  { %v659_v45 = vadd.f32 %v657_v44, %v649_v43 }
0x1251   :  { %1416 = vtanh.f32 %v659_v45 }
0x1257   :  { %v1417_v46 = vpop.eup %1416 }
0x1258   :  { %662 = vrot.lane.b32.xlu1 %v1417_v46, %s1484_s21 }
0x12ca   :  { %v663_v48 = vpop.permute.xlu1 %662 }
0x12cb   :  { %v1886_v50 = vmul.f32 %v663_v48, %v646_v40 }
0x12cd   :  { %674 = vrot.lane.b32.xlu2 %v1886_v50, %s1484_s21 }
0x1327   :  { %v675_v53 = vpop.permute.xlu2 %674 }
0x1328   :  { %v677_v54 = vsel %vm137_vm0, %v1320_v52, %v675_v53 }
0x1329   :  { %1321 = vmatmul.msk.f32.vlgmr.msrb.gmra.mxu2 %vm139_vm1, %v677_v54 }
0x132a   :  { %1157 = vmatpush.msrb.mxu2 %v1724_v8 }
0x132c   :  { %1158 = vmatpush.msrb.mxu2 %v1729_v9 }
0x132e   :  { %1159 = vmatpush.msrb.mxu2 %v1736_v10 }
0x1330   :  { %1160 = vmatpush.msrb.mxu2 %v1745_v11 }
0x13ac   :  { %v698_v56 = vpop.f32.mrf.mxu2 }
0x13ad   :  { %v699_v57 = vadd.f32 %v698_v56, %v1712_v49 }
0x13af   :  { %1418 = vtanh.f32 %v699_v57  ;;  %v1322_v59 = vmul.f32 -1.442695, %v699_v57 }
0x13b1   :  { %1420 = vpow2.f32 %v1322_v59 }
0x13b5   :  { %v1419_v58 = vpop.eup %1418 }
0x13b6   :  { %723 = vrot.lane.b32.xlu0 %v1419_v58, %s1484_s21 }
0x13b7   :  { %v1421_v60 = vpop.eup %1420 }
0x13b8   :  { %v704_v61 = vadd.f32 1.0, %v1421_v60 }
0x13ba   :  { %1422 = vrcp.f32 %v704_v61  ;;  %v716_v10 = vand.u32 2147483648, %v704_v61  ;;  %vm710_vm7 = vweird.f32 %v704_v61  ;;  %v714_v11 = vand.u32 2147483647, %v704_v61 }
0x13bc   :  { %v717_v2 = vor.u32 1.1754944e-38, %v716_v10  ;;  %vm715_vm9 = vcmp.eq.f32.partialorder %v714_v11, 8.507059e+37 }
0x13c0   :  { %v1423_v62 = vpop.eup %1422 }
0x13c1   :  { %v706_v8 = vmul.f32 %v1423_v62, %v704_v61  ;;  %vm711_vm6 = vweird.f32 %v1423_v62 }
0x13c2   :  { %vm712_vm8 = vmor %vm710_vm7, %vm711_vm6 }
0x13c3   :  { %v707_v63 = vsub.f32 1.0, %v706_v8 }
0x13c5   :  { %v708_v9 = vmul.f32 %v1423_v62, %v707_v63 }
0x13c7   :  { %v709_v0 = vadd.f32 %v1423_v62, %v708_v9 }
0x13c9   :  { %v713_v1 = vsel %vm712_vm8, %v1423_v62, %v709_v0 }
0x13ca   :  { %v718_v4 = vsel %vm715_vm9, %v717_v2, %v713_v1 }
0x13cb   :  { %v721_v6 = vmul.f32 %v718_v4, %v659_v45 }
0x1428   :  { %v724_v3 = vpop.permute.xlu0 %723 }
0x1429   :  { %v726_v5 = vmul.f32 %v724_v3, %v718_v4 }
0x142b   :  { %728 = vrot.lane.b32.xlu1 %v726_v5, %s1483_s13 }
0x149d   :  { %v729_v7 = vpop.permute.xlu1 %728 }
0x149e   :  { %v731_v12 = vadd.f32 %v729_v7, %v721_v6 }
0x14a0   :  { %1424 = vtanh.f32 %v731_v12 }
0x14a6   :  { %v1425_v13 = vpop.eup %1424 }
0x14a7   :  { %734 = vrot.lane.b32.xlu2 %v1425_v13, %s1484_s21 }
0x1501   :  { %v735_v14 = vpop.permute.xlu2 %734 }
0x1502   :  { %v737_v16 = vmul.f32 %v735_v14, %v718_v4 }
0x1504   :  { %739 = vrot.lane.b32.xlu0 %v737_v16, %s1483_s13 }
0x1576   :  { %v740_v17 = vpop.permute.xlu0 %739 }
0x1577   :  { %1323 = vmatmul.msk.f32.vlgmr.msrb.gmra.mxu1 %vm137_vm0, %v740_v17 }
0x15f4   :  { %v760_v18 = vpop.f32.mrf.mxu1 }
0x15f5   :  { %v761_v19 = vadd.f32 %v1786_v15, %v760_v18 }
0x15f7   :  { %1426 = vtanh.f32 %v761_v19  ;;  %v1324_v24 = vmul.f32 -1.442695, %v761_v19 }
0x15f9   :  { %1428 = vpow2.f32 %v1324_v24 }
0x15fd   :  { %v1427_v22 = vpop.eup %1426 }
0x15fe   :  { %785 = vrot.lane.b32.xlu1 %v1427_v22, %s1484_s21 }
0x15ff   :  { %v1429_v26 = vpop.eup %1428 }
0x1600   :  { %v766_v28 = vadd.f32 1.0, %v1429_v26 }
0x1602   :  { %1430 = vrcp.f32 %v766_v28  ;;  %v778_v21 = vand.u32 2147483648, %v766_v28  ;;  %vm772_vm11 = vweird.f32 %v766_v28  ;;  %v776_v23 = vand.u32 2147483647, %v766_v28 }
0x1604   :  { %v779_v27 = vor.u32 1.1754944e-38, %v778_v21  ;;  %vm777_vm13 = vcmp.eq.f32.partialorder %v776_v23, 8.507059e+37 }
0x1608   :  { %v1431_v30 = vpop.eup %1430 }
0x1609   :  { %v768_v32 = vmul.f32 %v1431_v30, %v766_v28  ;;  %vm773_vm10 = vweird.f32 %v1431_v30 }
0x160a   :  { %vm774_vm12 = vmor %vm772_vm11, %vm773_vm10 }
0x160b   :  { %v769_v33 = vsub.f32 1.0, %v768_v32 }
0x160d   :  { %v770_v34 = vmul.f32 %v1431_v30, %v769_v33 }
0x160f   :  { %v771_v20 = vadd.f32 %v1431_v30, %v770_v34 }
0x1611   :  { %v775_v25 = vsel %vm774_vm12, %v1431_v30, %v771_v20 }
0x1612   :  { %v780_v29 = vsel %vm777_vm13, %v779_v27, %v775_v25 }
0x1613   :  { %v783_v31 = vmul.f32 %v780_v29, %v731_v12 }
0x1670   :  { %v786_v35 = vpop.permute.xlu1 %785 }
0x1671   :  { %v788_v36 = vmul.f32 %v786_v35, %v780_v29 }
0x1673   :  { %790 = vrot.lane.b32.xlu2 %v788_v36, %s1483_s13 }
0x16cd   :  { %v791_v41 = vpop.permute.xlu2 %790 }
0x16ce   :  { %v793_v37 = vadd.f32 %v791_v41, %v783_v31  ;;  %v1330_v31 = vld [vmem:[%s2066_s1 + $0x30] sm:$0xff] }
0x16d0   :  { %1432 = vtanh.f32 %v793_v37 }
0x16d6   :  { %v1433_v38 = vpop.eup %1432 }
0x16d7   :  { %796 = vrot.lane.b32.xlu0 %v1433_v38, %s1484_s21 }
0x1749   :  { %v797_v39 = vpop.permute.xlu0 %796 }
0x174a   :  { %v1909_v40 = vmul.f32 %v797_v39, %v780_v29 }
0x174c   :  { %808 = vrot.lane.b32.xlu1 %v1909_v40, %s1484_s21 }
0x17be   :  { %v809_v43 = vpop.permute.xlu1 %808 }
0x17bf   :  { %v811_v44 = vsel %vm137_vm0, %v1325_v42, %v809_v43 }
0x17c0   :  { %1326 = vmatmul.msk.f32.vlgmr.msra.gmra.mxu2 %vm139_vm1, %v811_v44 }
0x1843   :  { %v832_v45 = vpop.f32.mrf.mxu2 }
0x1844   :  { %v833_v46 = vadd.f32 %v832_v45, %v1712_v49 }
0x1846   :  { %1434 = vtanh.f32 %v833_v46  ;;  %v1327_v52 = vmul.f32 -1.442695, %v833_v46 }
0x1848   :  { %1436 = vpow2.f32 %v1327_v52 }
0x184c   :  { %v1435_v48 = vpop.eup %1434 }
0x184d   :  { %857 = vrot.lane.b32.xlu2 %v1435_v48, %s1484_s21 }
0x184e   :  { %v1437_v53 = vpop.eup %1436 }
0x184f   :  { %v838_v54 = vadd.f32 1.0, %v1437_v53 }
0x1851   :  { %1438 = vrcp.f32 %v838_v54  ;;  %v850_v61 = vand.u32 2147483648, %v838_v54  ;;  %vm844_vm15 = vweird.f32 %v838_v54  ;;  %v848_v62 = vand.u32 2147483647, %v838_v54 }
0x1853   :  { %v851_v63 = vor.u32 1.1754944e-38, %v850_v61  ;;  %vm849_vm3 = vcmp.eq.f32.partialorder %v848_v62, 8.507059e+37 }
0x1857   :  { %v1439_v56 = vpop.eup %1438 }
0x1858   :  { %v840_v57 = vmul.f32 %v1439_v56, %v838_v54  ;;  %vm845_vm14 = vweird.f32 %v1439_v56 }
0x1859   :  { %vm846_vm2 = vmor %vm844_vm15, %vm845_vm14 }
0x185a   :  { %v841_v58 = vsub.f32 1.0, %v840_v57 }
0x185c   :  { %v842_v59 = vmul.f32 %v1439_v56, %v841_v58 }
0x185e   :  { %v843_v60 = vadd.f32 %v1439_v56, %v842_v59 }
0x1860   :  { %v847_v8 = vsel %vm846_vm2, %v1439_v56, %v843_v60 }
0x1861   :  { %v852_v0 = vsel %vm849_vm3, %v851_v63, %v847_v8 }
0x1862   :  { %v855_v11 = vmul.f32 %v852_v0, %v793_v37 }
0x18a7   :  { %v858_v9 = vpop.permute.xlu2 %857 }
0x18a8   :  { %v860_v10 = vmul.f32 %v858_v9, %v852_v0 }
0x18aa   :  { %862 = vrot.lane.b32.xlu0 %v860_v10, %s1483_s13 }
0x191c   :  { %v863_v1 = vpop.permute.xlu0 %862 }
0x191d   :  { %v865_v2 = vadd.f32 %v863_v1, %v855_v11 }
0x191f   :  { %1440 = vtanh.f32 %v865_v2 }
0x1925   :  { %v1441_v3 = vpop.eup %1440 }
0x1926   :  { %868 = vrot.lane.b32.xlu1 %v1441_v3, %s1484_s21 }
0x1998   :  { %v869_v4 = vpop.permute.xlu1 %868 }
0x1999   :  { %v871_v5 = vmul.f32 %v869_v4, %v852_v0 }
0x199b   :  { %873 = vrot.lane.b32.xlu2 %v871_v5, %s1483_s13 }
0x19f5   :  { %v874_v6 = vpop.permute.xlu2 %873 }
0x19f6   :  { %1328 = vmatmul.msk.f32.vlgmr.msrb.gmra.mxu0 %vm137_vm0, %v874_v6 }
0x1a73   :  { %v894_v7 = vpop.f32.mrf.mxu0 }
0x1a74   :  { %v895_v12 = vadd.f32 %v1786_v15, %v894_v7 }
0x1a76   :  { %1442 = vtanh.f32 %v895_v12  ;;  %v1329_v14 = vmul.f32 -1.442695, %v895_v12 }
0x1a78   :  { %1444 = vpow2.f32 %v1329_v14 }
0x1a7c   :  { %v1443_v13 = vpop.eup %1442 }
0x1a7d   :  { %919 = vrot.lane.b32.xlu0 %v1443_v13, %s1484_s21 }
0x1a7e   :  { %v1445_v16 = vpop.eup %1444 }
0x1a7f   :  { %v900_v17 = vadd.f32 1.0, %v1445_v16 }
0x1a81   :  { %1446 = vrcp.f32 %v900_v17  ;;  %v912_v28 = vand.u32 2147483648, %v900_v17  ;;  %vm906_vm5 = vweird.f32 %v900_v17  ;;  %v910_v30 = vand.u32 2147483647, %v900_v17 }
0x1a83   :  { %v913_v33 = vor.u32 1.1754944e-38, %v912_v28  ;;  %vm911_vm7 = vcmp.eq.f32.partialorder %v910_v30, 8.507059e+37 }
0x1a87   :  { %v1447_v18 = vpop.eup %1446 }
0x1a88   :  { %v902_v19 = vmul.f32 %v1447_v18, %v900_v17  ;;  %vm907_vm4 = vweird.f32 %v1447_v18 }
0x1a89   :  { %vm908_vm6 = vmor %vm906_vm5, %vm907_vm4 }
0x1a8a   :  { %v903_v22 = vsub.f32 1.0, %v902_v19 }
0x1a8c   :  { %v904_v24 = vmul.f32 %v1447_v18, %v903_v22 }
0x1a8e   :  { %v905_v26 = vadd.f32 %v1447_v18, %v904_v24 }
0x1a90   :  { %v909_v32 = vsel %vm908_vm6, %v1447_v18, %v905_v26 }
0x1a91   :  { %v914_v20 = vsel %vm911_vm7, %v913_v33, %v909_v32 }
0x1a92   :  { %v917_v23 = vmul.f32 %v914_v20, %v865_v2 }
0x1aef   :  { %v920_v34 = vpop.permute.xlu0 %919 }
0x1af0   :  { %v922_v21 = vmul.f32 %v920_v34, %v914_v20 }
0x1af2   :  { %924 = vrot.lane.b32.xlu1 %v922_v21, %s1483_s13 }
0x1b64   :  { %v925_v25 = vpop.permute.xlu1 %924 }
0x1b65   :  { %v927_v27 = vadd.f32 %v925_v25, %v917_v23  ;;  %v1335_v23 = vld [vmem:[%s2066_s1 + $0x38] sm:$0xff] }
0x1b67   :  { %1448 = vtanh.f32 %v927_v27 }
0x1b6d   :  { %v1449_v35 = vpop.eup %1448 }
0x1b6e   :  { %930 = vrot.lane.b32.xlu2 %v1449_v35, %s1484_s21 }
0x1bc8   :  { %v931_v29 = vpop.permute.xlu2 %930 }
0x1bc9   :  { %v1928_v36 = vmul.f32 %v931_v29, %v914_v20 }
0x1bcb   :  { %942 = vrot.lane.b32.xlu0 %v1928_v36, %s1484_s21 }
0x1c3d   :  { %v943_v41 = vpop.permute.xlu0 %942 }
0x1c3e   :  { %v945_v37 = vsel %vm137_vm0, %v1330_v31, %v943_v41 }
0x1c3f   :  { %1331 = vmatmul.msk.f32.vlgmr.msra.gmra.mxu1 %vm139_vm1, %v945_v37 }
0x1cbc   :  { %v966_v38 = vpop.f32.mrf.mxu1 }
0x1cbd   :  { %v967_v39 = vadd.f32 %v966_v38, %v1712_v49 }
0x1cbf   :  { %1450 = vtanh.f32 %v967_v39  ;;  %v1332_v43 = vmul.f32 -1.442695, %v967_v39 }
0x1cc1   :  { %1452 = vpow2.f32 %v1332_v43 }
0x1cc5   :  { %v1451_v42 = vpop.eup %1450 }
0x1cc6   :  { %991 = vrot.lane.b32.xlu1 %v1451_v42, %s1484_s21 }
0x1cc7   :  { %v1453_v44 = vpop.eup %1452 }
0x1cc8   :  { %v972_v45 = vadd.f32 1.0, %v1453_v44 }
0x1cca   :  { %1454 = vrcp.f32 %v972_v45  ;;  %v984_v56 = vand.u32 2147483648, %v972_v45  ;;  %vm978_vm9 = vweird.f32 %v972_v45  ;;  %v982_v57 = vand.u32 2147483647, %v972_v45 }
0x1ccc   :  { %v985_v59 = vor.u32 1.1754944e-38, %v984_v56  ;;  %vm983_vm11 = vcmp.eq.f32.partialorder %v982_v57, 8.507059e+37 }
0x1cd0   :  { %v1455_v46 = vpop.eup %1454 }
0x1cd1   :  { %v974_v48 = vmul.f32 %v1455_v46, %v972_v45  ;;  %vm979_vm8 = vweird.f32 %v1455_v46 }
0x1cd2   :  { %vm980_vm10 = vmor %vm978_vm9, %vm979_vm8 }
0x1cd3   :  { %v975_v52 = vsub.f32 1.0, %v974_v48 }
0x1cd5   :  { %v976_v53 = vmul.f32 %v1455_v46, %v975_v52 }
0x1cd7   :  { %v977_v54 = vadd.f32 %v1455_v46, %v976_v53 }
0x1cd9   :  { %v981_v58 = vsel %vm980_vm10, %v1455_v46, %v977_v54 }
0x1cda   :  { %v986_v61 = vsel %vm983_vm11, %v985_v59, %v981_v58 }
0x1cdb   :  { %v989_v8 = vmul.f32 %v986_v61, %v927_v27 }
0x1d38   :  { %v992_v60 = vpop.permute.xlu1 %991 }
0x1d39   :  { %v994_v62 = vmul.f32 %v992_v60, %v986_v61 }
0x1d3b   :  { %996 = vrot.lane.b32.xlu2 %v994_v62, %s1483_s13 }
0x1d95   :  { %v997_v63 = vpop.permute.xlu2 %996 }
0x1d96   :  { %v999_v9 = vadd.f32 %v997_v63, %v989_v8  ;;  %v1219_v8 = vld [vmem:[%s2069_s9 + $0x18] sm:$0xff]  ;;  %v1218_v63 = vld [vmem:[%s2069_s9 + $0x10] sm:$0xff] }
0x1d97   :  { %1260 = vmatpush.msra.mxu3 %v1219_v8 }
0x1d98   :  { %1456 = vtanh.f32 %v999_v9 }
0x1d99   :  { %1261 = vmatpush.msra.mxu3 %v1218_v63 }
0x1d9e   :  { %v1457_v0 = vpop.eup %1456 }
0x1d9f   :  { %1002 = vrot.lane.b32.xlu0 %v1457_v0, %s1484_s21 }
0x1e11   :  { %v1003_v10 = vpop.permute.xlu0 %1002 }
0x1e12   :  { %v1005_v11 = vmul.f32 %v1003_v10, %v986_v61 }
0x1e14   :  { %1007 = vrot.lane.b32.xlu1 %v1005_v11, %s1483_s13 }
0x1e86   :  { %v1008_v1 = vpop.permute.xlu1 %1007 }
0x1e87   :  { %1333 = vmatmul.msk.f32.vlgmr.msrb.gmra.mxu3 %vm137_vm0, %v1008_v1 }
0x1f0a   :  { %v1028_v2 = vpop.f32.mrf.mxu3 }
0x1f0b   :  { %v1029_v3 = vadd.f32 %v1786_v15, %v1028_v2  ;;  %v1482_v2 = vld [vmem:[%s2067_s8] ss:$0 sm:$0xff] }
0x1f0d   :  { %1458 = vtanh.f32 %v1029_v3  ;;  %v1334_v5 = vmul.f32 -1.442695, %v1029_v3 }
0x1f0f   :  { %1460 = vpow2.f32 %v1334_v5  ;;  %v1994_v5 = vld [vmem:[%s2070_s10] ss:$0 sm:$0xff] }
0x1f13   :  { %v1459_v4 = vpop.eup %1458 }
0x1f14   :  { %1053 = vrot.lane.b32.xlu2 %v1459_v4, %s1484_s21 }
0x1f15   :  { %v1461_v6 = vpop.eup %1460 }
0x1f16   :  { %v1034_v7 = vadd.f32 1.0, %v1461_v6 }
0x1f18   :  { %1462 = vrcp.f32 %v1034_v7  ;;  %v1046_v18 = vand.u32 2147483648, %v1034_v7  ;;  %vm1040_vm13 = vweird.f32 %v1034_v7  ;;  %v1044_v19 = vand.u32 2147483647, %v1034_v7 }
0x1f1a   :  { %v1047_v22 = vor.u32 1.1754944e-38, %v1046_v18  ;;  %vm1045_vm15 = vcmp.eq.f32.partialorder %v1044_v19, 8.507059e+37 }
0x1f1e   :  { %v1463_v12 = vpop.eup %1462 }
0x1f1f   :  { %v1036_v13 = vmul.f32 %v1463_v12, %v1034_v7  ;;  %vm1041_vm12 = vweird.f32 %v1463_v12 }
0x1f20   :  { %vm1042_vm14 = vmor %vm1040_vm13, %vm1041_vm12 }
0x1f21   :  { %v1037_v14 = vsub.f32 1.0, %v1036_v13 }
0x1f23   :  { %v1038_v16 = vmul.f32 %v1463_v12, %v1037_v14 }
0x1f25   :  { %v1039_v17 = vadd.f32 %v1463_v12, %v1038_v16 }
0x1f27   :  { %v1043_v15 = vsel %vm1042_vm14, %v1463_v12, %v1039_v17 }
0x1f28   :  { %v1048_v26 = vsel %vm1045_vm15, %v1047_v22, %v1043_v15 }
0x1f29   :  { %v1051_v30 = vmul.f32 %v1048_v26, %v999_v9  ;;  %v1217_v9 = vld [vmem:[%s2069_s9 + $0x8] sm:$0xff] }
0x1f2a   :  { %1262 = vmatpush.msra.mxu3 %v1217_v9 }
0x1f6e   :  { %v1054_v24 = vpop.permute.xlu2 %1053 }
0x1f6f   :  { %v1056_v28 = vmul.f32 %v1054_v24, %v1048_v26 }
0x1f71   :  { %1058 = vrot.lane.b32.xlu0 %v1056_v28, %s1483_s13 }
0x1fe3   :  { %v1059_v32 = vpop.permute.xlu0 %1058 }
0x1fe4   :  { %v1061_v33 = vadd.f32 %v1059_v32, %v1051_v30 }
0x1fe6   :  { %1464 = vtanh.f32 %v1061_v33 }
0x1fec   :  { %v1465_v34 = vpop.eup %1464 }
0x1fed   :  { %1064 = vrot.lane.b32.xlu1 %v1465_v34, %s1484_s21 }
0x205f   :  { %v1065_v20 = vpop.permute.xlu1 %1064 }
0x2060   :  { %v1947_v21 = vmul.f32 %v1065_v20, %v1048_v26 }
0x2062   :  { %1076 = vrot.lane.b32.xlu2 %v1947_v21, %s1484_s21 }
0x20bc   :  { %v1077_v25 = vpop.permute.xlu2 %1076 }
0x20bd   :  { %v1079_v27 = vsel %vm137_vm0, %v1335_v23, %v1077_v25 }
0x20be   :  { %1336 = vmatmul.msk.f32.vlgmr.msra.gmra.mxu0 %vm139_vm1, %v1079_v27 }
0x213b   :  { %v1100_v35 = vpop.f32.mrf.mxu0 }
0x213c   :  { %v1101_v29 = vadd.f32 %v1100_v35, %v1712_v49 }
0x213e   :  { %1466 = vtanh.f32 %v1101_v29  ;;  %v1337_v41 = vmul.f32 -1.442695, %v1101_v29 }
0x2140   :  { %1468 = vpow2.f32 %v1337_v41 }
0x2144   :  { %v1467_v31 = vpop.eup %1466 }
0x2145   :  { %1125 = vrot.lane.b32.xlu0 %v1467_v31, %s1484_s21 }
0x2146   :  { %v1469_v37 = vpop.eup %1468 }
0x2147   :  { %v1106_v38 = vadd.f32 1.0, %v1469_v37 }
0x2149   :  { %1470 = vrcp.f32 %v1106_v38  ;;  %v1118_v46 = vand.u32 2147483648, %v1106_v38  ;;  %vm1112_vm3 = vweird.f32 %v1106_v38  ;;  %v1116_v48 = vand.u32 2147483647, %v1106_v38 }
0x214b   :  { %v1119_v52 = vor.u32 1.1754944e-38, %v1118_v46  ;;  %vm1117_vm5 = vcmp.eq.f32.partialorder %v1116_v48, 8.507059e+37 }
0x214f   :  { %v1471_v39 = vpop.eup %1470 }
0x2150   :  { %v1108_v42 = vmul.f32 %v1471_v39, %v1106_v38  ;;  %vm1113_vm2 = vweird.f32 %v1471_v39 }
0x2151   :  { %vm1114_vm4 = vmor %vm1112_vm3, %vm1113_vm2 }
0x2152   :  { %v1109_v43 = vsub.f32 1.0, %v1108_v42 }
0x2154   :  { %v1110_v44 = vmul.f32 %v1471_v39, %v1109_v43 }
0x2156   :  { %v1111_v45 = vadd.f32 %v1471_v39, %v1110_v44 }
0x2158   :  { %v1115_v49 = vsel %vm1114_vm4, %v1471_v39, %v1111_v45 }
0x2159   :  { %v1120_v54 = vsel %vm1117_vm5, %v1119_v52, %v1115_v49 }
0x215a   :  { %v1123_v57 = vmul.f32 %v1120_v54, %v1061_v33 }
0x21b7   :  { %v1126_v53 = vpop.permute.xlu0 %1125 }
0x21b8   :  { %v1128_v56 = vmul.f32 %v1126_v53, %v1120_v54 }
0x21ba   :  { %1130 = vrot.lane.b32.xlu1 %v1128_v56, %s1483_s13 }
0x222c   :  { %v1131_v58 = vpop.permute.xlu1 %1130 }
0x222d   :  { %v1959_v59 = vadd.f32 %v1131_v58, %v1123_v57 }
0x222f   :  { %1472 = vtanh.f32 %v1959_v59 }
0x2235   :  { %v1473_v60 = vpop.eup %1472 }
0x2236   :  { %1136 = vrot.lane.b32.xlu2 %v1473_v60, %s1484_s21 }
0x2290   :  { %v1137_v61 = vpop.permute.xlu2 %1136 }
0x2291   :  { %v1139_v62 = vmul.f32 %v1137_v61, %v1120_v54 }
0x2293   :  { %1141 = vrot.lane.b32.xlu0 %v1139_v62, %s1483_s13 }
0x229b   :  { %266 = vrot.lane.b32.xlu0 %v1793_v47, %s1483_s13  ;;  %v1216_v47 = vld [vmem:[%s2069_s9] sm:$0xff] }
0x229c   :  { %1263 = vmatpush.msra.mxu3 %v1216_v47 }
0x22a3   :  { %533 = vrot.lane.b32.xlu0 %v1851_v55, %s1483_s13 }
0x22ab   :  { %935 = vrot.lane.b32.xlu0 %v1928_v36, %s1483_s13 }
0x2305   :  { %v1142_v55 = vpop.permute.xlu0 %1141 }
0x2306   :  { %1338 = vmatmul.msk.f32.vlgmr.msrb.gmra.mxu2 %vm137_vm0, %v1142_v55 }
0x230d   :  { %v267_v36 = vpop.permute.xlu0 %266 }
0x230e   :  { %269 = vst.msk [vmem:[#allocation2] sm:$0xff] %vm137_vm0, %v267_v36 }
0x2315   :  { %v534_v0 = vpop.permute.xlu0 %533  ;;  %v1208_v10 = vld [vmem:[#allocation2] sm:$0xff] }
0x2316   :  { %537 = vst.msk [vmem:[#allocation2 + $0x10] sm:$0xff] %vm137_vm0, %v534_v0  ;;  %1340 = vmatmul.msk.f32.vlgmr.msra.gmra.mxu3 %vm137_vm0, %v1208_v10 }
0x231d   :  { %v936_v11 = vpop.permute.xlu0 %935 }
0x231e   :  { %939 = vst.msk [vmem:[#allocation2 + $0x28] sm:$0xff] %vm137_vm0, %v936_v11 }
0x2325   :  { %v1213_v46 = vld [vmem:[#allocation2 + $0x28] sm:$0xff] }
0x2389   :  { %v1162_v1 = vpop.f32.mrf.mxu2 }
0x238a   :  { %v1163_v3 = vadd.f32 %v1482_v2, %v1162_v1 }
0x238c   :  { %1474 = vtanh.f32 %v1163_v3  ;;  %v1339_v12 = vmul.f32 -1.442695, %v1163_v3 }
0x238e   :  { %1476 = vpow2.f32 %v1339_v12 }
0x2392   :  { %v1475_v4 = vpop.eup %1474 }
0x2393   :  { %1187 = vrot.lane.b32.xlu1 %v1475_v4, %s1484_s21 }
0x2394   :  { %v1477_v13 = vpop.eup %1476 }
0x2395   :  { %v1168_v14 = vadd.f32 1.0, %v1477_v13 }
0x2397   :  { %1478 = vrcp.f32 %v1168_v14  ;;  %v1180_v15 = vand.u32 2147483648, %v1168_v14  ;;  %vm1174_vm7 = vweird.f32 %v1168_v14  ;;  %v1178_v22 = vand.u32 2147483647, %v1168_v14 }
0x2399   :  { %v1265_v6 = vpop.f32.mrf.mxu3  ;;  %vm1179_vm9 = vcmp.eq.f32.partialorder %v1178_v22, 8.507059e+37 }
0x239a   :  { %v1266_v7 = vadd.f32 %v1994_v5, %v1265_v6 }
0x239b   :  { %399 = vrot.lane.b32.xlu1 %v1824_v51, %s1483_s13 }
0x239c   :  { %1289 = vst.msk [vmem:[%s2071_s11] sm:$0xff] %vm139_vm1, %v1266_v7 }
0x239d   :  { %v1479_v16 = vpop.eup %1478 }
0x239e   :  { %v1170_v17 = vmul.f32 %v1479_v16, %v1168_v14  ;;  %vm1175_vm6 = vweird.f32 %v1479_v16 }
0x239f   :  { %vm1176_vm8 = vmor %vm1174_vm7, %vm1175_vm6 }
0x23a0   :  { %v1171_v18 = vsub.f32 1.0, %v1170_v17 }
0x23a2   :  { %v1172_v51 = vmul.f32 %v1479_v16, %v1171_v18 }
0x23a3   :  { %667 = vrot.lane.b32.xlu1 %v1886_v50, %s1483_s13  ;;  %v1181_v50 = vor.u32 1.1754944e-38, %v1180_v15 }
0x23a4   :  { %v1173_v19 = vadd.f32 %v1479_v16, %v1172_v51 }
0x23a6   :  { %v1177_v24 = vsel %vm1176_vm8, %v1479_v16, %v1173_v19 }
0x23a7   :  { %v1182_v28 = vsel %vm1179_vm9, %v1181_v50, %v1177_v24 }
0x23a8   :  { %v1185_v25 = vmul.f32 %v1182_v28, %v1959_v59 }
0x23ab   :  { %1069 = vrot.lane.b32.xlu1 %v1947_v21, %s1483_s13  ;;  %v1210_v21 = vld [vmem:[#allocation2 + $0x10] sm:$0xff] }
0x2405   :  { %v1188_v26 = vpop.permute.xlu1 %1187 }
0x2406   :  { %v1190_v30 = vmul.f32 %v1188_v26, %v1182_v28 }
0x2408   :  { %1192 = vrot.lane.b32.xlu2 %v1190_v30, %s1483_s13 }
0x240d   :  { %v400_v32 = vpop.permute.xlu1 %399 }
0x240e   :  { %403 = vst.msk [vmem:[#allocation2 + $0x8] sm:$0xff] %vm137_vm0, %v400_v32 }
0x2415   :  { %v668_v33 = vpop.permute.xlu1 %667  ;;  %v1209_v34 = vld [vmem:[#allocation2 + $0x8] sm:$0xff] }
0x2416   :  { %671 = vst.msk [vmem:[#allocation2 + $0x18] sm:$0xff] %vm137_vm0, %v668_v33  ;;  %1341 = vmatmul.msk.f32.gmra.mxu3 %vm137_vm0, %v1209_v34 }
0x241d   :  { %v1070_v20 = vpop.permute.xlu1 %1069  ;;  %v1211_v23 = vld [vmem:[#allocation2 + $0x18] sm:$0xff] }
0x241e   :  { %1073 = vst.msk [vmem:[#allocation2 + $0x30] sm:$0xff] %vm137_vm0, %v1070_v20  ;;  %1342 = vmatmul.msk.f32.gmra.mxu3 %vm137_vm0, %v1210_v21 }
0x2425   :  { %v1214_v48 = vld [vmem:[#allocation2 + $0x30] sm:$0xff] }
0x2426   :  { %1343 = vmatmul.msk.f32.gmra.mxu3 %vm137_vm0, %v1211_v23 }
0x2462   :  { %v1193_v27 = vpop.permute.xlu2 %1192 }
0x2463   :  { %v1195_v35 = vadd.f32 %v1193_v27, %v1185_v25 }
0x2465   :  { %1480 = vtanh.f32 %v1195_v35 }
0x246b   :  { %v1481_v29 = vpop.eup %1480 }
0x246c   :  { %1198 = vrot.lane.b32.xlu2 %v1481_v29, %s1484_s21 }
0x2474   :  { %801 = vrot.lane.b32.xlu2 %v1909_v40, %s1483_s13 }
0x2499   :  { %v1268_v31 = vpop.f32.mrf.mxu3 }
0x249a   :  { %v1269_v41 = vadd.f32 %v1994_v5, %v1268_v31 }
0x249c   :  { %1290 = vst.msk [vmem:[%s2071_s11 + $0x8] sm:$0xff] %vm139_vm1, %v1269_v41 }
0x24a1   :  { %v1271_v37 = vpop.f32.mrf.mxu3 }
0x24a2   :  { %v1272_v38 = vadd.f32 %v1994_v5, %v1271_v37 }
0x24a4   :  { %1291 = vst.msk [vmem:[%s2071_s11 + $0x10] sm:$0xff] %vm139_vm1, %v1272_v38 }
0x24a9   :  { %v1274_v39 = vpop.f32.mrf.mxu3 }
0x24aa   :  { %v1275_v42 = vadd.f32 %v1994_v5, %v1274_v39 }
0x24ac   :  { %1292 = vst.msk [vmem:[%s2071_s11 + $0x18] sm:$0xff] %vm139_vm1, %v1275_v42 }
0x24c6   :  { %v1199_v40 = vpop.permute.xlu2 %1198 }
0x24c7   :  { %v1201_v43 = vmul.f32 %v1199_v40, %v1182_v28 }
0x24c9   :  { %1203 = vrot.lane.b32.xlu2 %v1201_v43, %s1483_s13 }
0x24ce   :  { %v802_v44 = vpop.permute.xlu2 %801 }
0x24cf   :  { %805 = vst.msk [vmem:[#allocation2 + $0x20] sm:$0xff] %vm137_vm0, %v802_v44 }
0x24d6   :  { %v1212_v45 = vld [vmem:[#allocation2 + $0x20] sm:$0xff] }
0x24d7   :  { %1344 = vmatmul.msk.f32.gmra.mxu3 %vm137_vm0, %v1212_v45 }
0x24df   :  { %1345 = vmatmul.msk.f32.gmra.mxu3 %vm137_vm0, %v1213_v46 }
0x24e7   :  { %1346 = vmatmul.msk.f32.gmra.mxu3 %vm137_vm0, %v1214_v48 }
0x2523   :  { %v1204_v49 = vpop.permute.xlu2 %1203 }
0x2524   :  { %1207 = vst.msk [vmem:[#allocation2 + $0x38] sm:$0xff] %vm137_vm0, %v1204_v49 }
0x252b   :  { %v1215_v52 = vld [vmem:[#allocation2 + $0x38] sm:$0xff] }
0x252c   :  { %1347 = vmatmul.msk.f32.gmra.mxu3 %vm137_vm0, %v1215_v52 }
0x255a   :  { %v1277_v53 = vpop.f32.mrf.mxu3 }
0x255b   :  { %v1278_v54 = vadd.f32 %v1994_v5, %v1277_v53 }
0x255d   :  { %1293 = vst.msk [vmem:[%s2071_s11 + $0x20] sm:$0xff] %vm139_vm1, %v1278_v54 }
0x2562   :  { %v1280_v56 = vpop.f32.mrf.mxu3 }
0x2563   :  { %v1281_v57 = vadd.f32 %v1994_v5, %v1280_v56 }
0x2565   :  { %1294 = vst.msk [vmem:[%s2071_s11 + $0x28] sm:$0xff] %vm139_vm1, %v1281_v57 }
0x256a   :  { %v1283_v58 = vpop.f32.mrf.mxu3 }
0x256b   :  { %v1284_v59 = vadd.f32 %v1994_v5, %v1283_v58 }
0x256d   :  { %1295 = vst.msk [vmem:[%s2071_s11 + $0x30] sm:$0xff] %vm139_vm1, %v1284_v59 }
0x25af   :  { %v1286_v60 = vpop.f32.mrf.mxu3 }
0x25b0   :  { %v1287_v61 = vadd.f32 %v1994_v5, %v1286_v60 }
0x25b2   :  { %1296 = vst.msk [vmem:[%s2071_s11 + $0x38] sm:$0xff] %vm139_vm1, %v1287_v61 }

</bundles_post_ra>
